<compile_context>
chip_gen: v6e
topology: v6e:2x2x1
jax: 0.10.0
libtpu: 0.0.40
codegen_flags: <defaults>
</compile_context>

<pallas_src>
import math
import functools

import jax
import jax.numpy as jnp
from jax import lax
from jax.experimental import pallas as pl
from jax.experimental.pallas import tpu as pltpu


def _round_up(n, m):
    return ((n + m - 1) // m) * m


def lstm_encoder_kernel(
    x2d_ref,      # (T*Bp, D)    f32  batch-padded, pre-flattened in wrapper
    a_ref,        # (Bp, A)      f32
    w_ih_ref,     # (D, 4*Hp)    f32  transposed, gate cols [i,f,o,g], H-padded
    w_hh_ref,     # (Hp, 4*Hp)   f32  transposed, gate cols [i,f,o,g], H-padded
    b_ref,        # (1, 4*Hp)    f32  (b_ih + b_hh), same permutation/padding
    attn_v_ref,   # (1, Hp)      f32  attn_v / sqrt(H), zero-padded
    w_lin_h_ref,  # (Hp, H)      f32  trt_linear weight[:, :H].T, zero-pad rows
    w_lin_a_ref,  # (A, H)       f32  trt_linear weight[:, H:].T
    b_lin_ref,    # (1, H)       f32
    out_ref,      # (Bp, H)      f32
    xw_ref,       # scratch VMEM (T*Bp, 4*Hp) f32
    *,
    seq_len,
    batch_pad,
    hidden_pad,
):
    T, Bp, Hp = seq_len, batch_pad, hidden_pad

    # ---- hoisted input projection: one big matmul, off the serial path ----
    xw_ref[...] = (
        jnp.dot(x2d_ref[...], w_ih_ref[...], preferred_element_type=jnp.float32)
        + b_ref[...]
    )

    w_hh = w_hh_ref[...]      # loop-invariant MXU RHS, loaded once
    v = attn_v_ref[...]       # (1, Hp), already / sqrt(H)

    h = jnp.zeros((Bp, Hp), jnp.float32)
    c = jnp.zeros((Bp, Hp), jnp.float32)
    m_run = None              # online-softmax running max   (Bp, 1)
    l_run = None              # online-softmax running denom (Bp, 1)
    acc = None                # online-softmax weighted h    (Bp, Hp)

    # ---- LSTM recurrence + fused online-softmax attention, fully unrolled ----
    for t in range(T):  # static trip count -> full unroll (small T)
        xw_t = xw_ref[pl.ds(t * Bp, Bp), :]            # sublane-aligned slab
        gates = xw_t + jnp.dot(h, w_hh, preferred_element_type=jnp.float32)
        sig = jax.nn.sigmoid(gates[:, : 3 * Hp])       # [i | f | o], lane-aligned
        g_g = jnp.tanh(gates[:, 3 * Hp:])              # g
        i_g = sig[:, 0 * Hp:1 * Hp]
        f_g = sig[:, 1 * Hp:2 * Hp]
        o_g = sig[:, 2 * Hp:3 * Hp]
        c = f_g * c + i_g * g_g
        h = o_g * jnp.tanh(c)

        # attention score for this step; accumulation is off the h->h chain
        s_t = jnp.sum(h * v, axis=-1, keepdims=True)   # (Bp, 1)
        if t == 0:
            m_run = s_t
            l_run = jnp.ones_like(s_t)
            acc = h
        else:
            m_new = jnp.maximum(m_run, s_t)
            alpha = jnp.exp(m_run - m_new)
            p = jnp.exp(s_t - m_new)
            l_run = alpha * l_run + p
            acc = alpha * acc + p * h
            m_run = m_new

    attn_h = acc * pl.reciprocal(l_run, approx=False)  # exact; epilogue-only

    # ---- cat + Linear (as split matmul) ----
    out_ref[...] = (
        jnp.dot(attn_h, w_lin_h_ref[...], preferred_element_type=jnp.float32)
        + jnp.dot(a_ref[...], w_lin_a_ref[...], preferred_element_type=jnp.float32)
        + b_lin_ref[...]
    )


def lstm_encoder_forward(x, a, w_ih, w_hh, b_ih, b_hh, attn_v, w_lin, b_lin):
    """x: (T, B, D) seq-major, a: (B, A); weights in PyTorch nn.LSTM/nn.Linear layout."""
    T, B, D = x.shape
    _, A = a.shape
    H = w_hh.shape[1]
    Hp = _round_up(H, 128)   # lane-pad hidden dim -> full-vreg gate slabs
    Bp = _round_up(B, 8)     # sublane-pad batch

    def pack_gates(w, pad_rows=None):
        # w: (4H, in_f) PyTorch layout; gate row-blocks [i, f, g, o].
        # Returns (in_f[, padded], 4*Hp): transposed, gate cols permuted to
        # [i, f, o, g], each gate block zero-padded from H to Hp lanes.
        blocks = [w[k * H:(k + 1) * H].T for k in (0, 1, 3, 2)]
        packed = jnp.concatenate(
            [jnp.pad(blk, ((0, 0), (0, Hp - H))) for blk in blocks], axis=1)
        if pad_rows is not None:
            packed = jnp.pad(packed, ((0, pad_rows - packed.shape[0]), (0, 0)))
        return packed

    w_ih_t = pack_gates(jnp.asarray(w_ih))                       # (D, 4Hp)
    w_hh_t = pack_gates(jnp.asarray(w_hh), pad_rows=Hp)          # (Hp, 4Hp)
    b_comb = pack_gates((b_ih + b_hh).reshape(4 * H, 1))         # (1, 4Hp)
    attn_v_scaled = jnp.pad(attn_v / math.sqrt(H), (0, Hp - H)).reshape(1, Hp)
    w_lin_h_t = jnp.pad(w_lin[:, :H].T, ((0, Hp - H), (0, 0)))   # (Hp, H)
    w_lin_a_t = jnp.asarray(w_lin[:, H:].T)                      # (A, H)
    b_lin_2d = b_lin.reshape(1, H)

    # Batch-pad and pre-flatten in the wrapper (no in-kernel reshape/relayout).
    x_p = jnp.pad(x, ((0, 0), (0, Bp - B), (0, 0))).reshape(T * Bp, D)
    a_p = jnp.pad(a, ((0, Bp - B), (0, 0)))

    inputs = (x_p, a_p, w_ih_t, w_hh_t, b_comb, attn_v_scaled,
              w_lin_h_t, w_lin_a_t, b_lin_2d)

    kernel = functools.partial(
        lstm_encoder_kernel, seq_len=T, batch_pad=Bp, hidden_pad=Hp)

    # Generation-aware scoped-VMEM budget: inputs + xw scratch with
    # double-buffer headroom, capped at 3/4 of this chip's physical VMEM
    # (128 MiB on v5e/v6e, 64 MiB per TensorCore on v7x).
    in_bytes = sum(int(v.size) * v.dtype.itemsize for v in inputs)
    scratch_bytes = T * Bp * 4 * Hp * 4
    need = 2 * (in_bytes + scratch_bytes) + (1 << 20)
    try:
        cap = int(getattr(pltpu.get_tpu_info(), "vmem_capacity_bytes", 64 << 20))
    except Exception:
        cap = 64 << 20
    vmem_limit = int(min(max(need, 16 << 20), (cap * 3) // 4))

    vmem = lambda: pl.BlockSpec(memory_space=pltpu.MemorySpace.VMEM)
    out_p = pl.pallas_call(
        kernel,
        out_shape=jax.ShapeDtypeStruct((Bp, H), jnp.float32),
        in_specs=[vmem() for _ in range(len(inputs))],
        out_specs=vmem(),
        scratch_shapes=[pltpu.VMEM((T * Bp, 4 * Hp), jnp.float32)],
        compiler_params=pltpu.CompilerParams(vmem_limit_bytes=vmem_limit),
    )(*inputs)
    return out_p[:B]


def reference_forward(x, a, w_ih, w_hh, b_ih, b_hh, attn_v, w_lin, b_lin):
    """Pure-JAX replica of the PyTorch LstmEncoder.forward (f32, exact gate order)."""
    T, B, D = x.shape
    H = w_hh.shape[1]

    def step(carry, x_t):
        h, c = carry
        gates = x_t @ w_ih.T + b_ih + h @ w_hh.T + b_hh
        i_g = jax.nn.sigmoid(gates[:, 0 * H:1 * H])
        f_g = jax.nn.sigmoid(gates[:, 1 * H:2 * H])
        g_g = jnp.tanh(gates[:, 2 * H:3 * H])
        o_g = jax.nn.sigmoid(gates[:, 3 * H:4 * H])
        c_new = f_g * c + i_g * g_g
        h_new = o_g * jnp.tanh(c_new)
        return (h_new, c_new), h_new

    h0 = jnp.zeros((B, H), jnp.float32)
    _, h = lax.scan(step, (h0, h0), x)                       # (T, B, H)
    attn_score = (h @ attn_v) / math.sqrt(H)                 # (T, B)
    attn_weight = jax.nn.softmax(attn_score, axis=0)
    attn_h = jnp.sum(h * attn_weight[:, :, None], axis=0)    # (B, H)
    a_attn_h = jnp.concatenate((attn_h, a), axis=1)
    return a_attn_h @ w_lin.T + b_lin


if __name__ == "__main__":
    T, B, D, H, A = 8, 2, 16, 32, 4   # seq, batch, input_dim, hidden_dim, treatment_dim

    key = jax.random.PRNGKey(0)
    keys = jax.random.split(key, 8)

    # PyTorch-style deterministic init (uniform(-1/sqrt(H), 1/sqrt(H)) for LSTM,
    # uniform(-1/sqrt(fan_in), ...) for Linear); attn_v init = ones.
    k_lstm = 1.0 / math.sqrt(H)
    w_ih = jax.random.uniform(keys[0], (4 * H, D), jnp.float32, -k_lstm, k_lstm)
    w_hh = jax.random.uniform(keys[1], (4 * H, H), jnp.float32, -k_lstm, k_lstm)
    b_ih = jax.random.uniform(keys[2], (4 * H,), jnp.float32, -k_lstm, k_lstm)
    b_hh = jax.random.uniform(keys[3], (4 * H,), jnp.float32, -k_lstm, k_lstm)
    attn_v = jnp.ones((H,), jnp.float32)
    k_lin = 1.0 / math.sqrt(H + A)
    w_lin = jax.random.uniform(keys[4], (H, H + A), jnp.float32, -k_lin, k_lin)
    b_lin = jax.random.uniform(keys[5], (H,), jnp.float32, -k_lin, k_lin)

    x = jax.random.normal(keys[6], (T, B, D), jnp.float32)
    a = jax.random.normal(keys[7], (B, A), jnp.float32)

    C = lstm_encoder_forward(x, a, w_ih, w_hh, b_ih, b_hh, attn_v, w_lin, b_lin)
    C = jax.block_until_ready(C)

    C_ref = reference_forward(x, a, w_ih, w_hh, b_ih, b_hh, attn_v, w_lin, b_lin)
    assert C.shape == (B, H)
    assert jnp.allclose(C, C_ref, atol=1e-3, rtol=1e-3), (
        f"max abs err {jnp.max(jnp.abs(C - C_ref))}"
    )
    print("KERNEL_OK")
</pallas_src>

<mosaic_0001>
module attributes {stable_mosaic.version = 11 : i64} {
  func.func @lstm_encoder_kernel(%arg0: memref<64x16xf32, #tpu.memory_space<vmem>>, %arg1: memref<8x4xf32, #tpu.memory_space<vmem>>, %arg2: memref<16x512xf32, #tpu.memory_space<vmem>>, %arg3: memref<128x512xf32, #tpu.memory_space<vmem>>, %arg4: memref<1x512xf32, #tpu.memory_space<vmem>>, %arg5: memref<1x128xf32, #tpu.memory_space<vmem>>, %arg6: memref<128x32xf32, #tpu.memory_space<vmem>>, %arg7: memref<4x32xf32, #tpu.memory_space<vmem>>, %arg8: memref<1x32xf32, #tpu.memory_space<vmem>>, %arg9: memref<8x32xf32, #tpu.memory_space<vmem>>, %arg10: memref<64x512xf32, #tpu.memory_space<vmem>>) attributes {dimension_semantics = [], scalar_prefetch = 0 : i64, scratch_operands = 1 : i64, tpu.core_type = #tpu.core_type<tc>} {
    %c0 = arith.constant 0 : index
    %c0_0 = arith.constant 0 : index
    %0 = vector.load %arg0[%c0, %c0_0] : memref<64x16xf32, #tpu.memory_space<vmem>>, vector<64x16xf32>
    %c0_1 = arith.constant 0 : index
    %c0_2 = arith.constant 0 : index
    %1 = vector.load %arg2[%c0_1, %c0_2] : memref<16x512xf32, #tpu.memory_space<vmem>>, vector<16x512xf32>
    %cst = arith.constant dense<0.000000e+00> : vector<64x512xf32>
    %2 = tpu.matmul %0, %1, %cst {dimension_numbers = #tpu.dot_dimension_numbers<[1], [0], [0], [1], [0, 0, 1, 1], [], []>} : vector<64x16xf32>, vector<16x512xf32>, vector<64x512xf32> -> vector<64x512xf32>
    %c0_3 = arith.constant 0 : index
    %c0_4 = arith.constant 0 : index
    %3 = vector.load %arg4[%c0_3, %c0_4] : memref<1x512xf32, #tpu.memory_space<vmem>>, vector<1x512xf32>
    %4 = vector.broadcast %3 : vector<1x512xf32> to vector<64x512xf32>
    %5 = arith.addf %2, %4 : vector<64x512xf32>
    %c0_5 = arith.constant 0 : index
    %c0_6 = arith.constant 0 : index
    %6 = vector.load %arg10[%c0_5, %c0_6] : memref<64x512xf32, #tpu.memory_space<vmem>>, vector<64x512xf32>
    tpu.vector_store %arg10[%c0_5, %c0_6], %5 {strides = array<i32>} : memref<64x512xf32, #tpu.memory_space<vmem>>, vector<64x512xf32>,
    %c0_7 = arith.constant 0 : index
    %c0_8 = arith.constant 0 : index
    %7 = vector.load %arg3[%c0_7, %c0_8] : memref<128x512xf32, #tpu.memory_space<vmem>>, vector<128x512xf32>
    %c0_9 = arith.constant 0 : index
    %c0_10 = arith.constant 0 : index
    %8 = vector.load %arg5[%c0_9, %c0_10] : memref<1x128xf32, #tpu.memory_space<vmem>>, vector<1x128xf32>
    %cst_11 = arith.constant 0.000000e+00 : f32
    %9 = vector.broadcast %cst_11 : f32 to vector<8x128xf32>
    %cst_12 = arith.constant 0.000000e+00 : f32
    %10 = vector.broadcast %cst_12 : f32 to vector<8x128xf32>
    %c0_13 = arith.constant 0 : index
    %c0_14 = arith.constant 0 : index
    %11 = vector.load %arg10[%c0_13, %c0_14] : memref<64x512xf32, #tpu.memory_space<vmem>>, vector<8x512xf32>
    %cst_15 = arith.constant dense<0.000000e+00> : vector<8x512xf32>
    %12 = tpu.matmul %9, %7, %cst_15 {dimension_numbers = #tpu.dot_dimension_numbers<[1], [0], [0], [1], [0, 0, 1, 1], [], []>} : vector<8x128xf32>, vector<128x512xf32>, vector<8x512xf32> -> vector<8x512xf32>
    %13 = arith.addf %11, %12 : vector<8x512xf32>
    %14 = vector.extract_strided_slice %13 {offsets = [0, 0], sizes = [8, 384], strides = [1, 1]} : vector<8x512xf32> to vector<8x384xf32>
    %15 = arith.negf %14 : vector<8x384xf32>
    %16 = math.exp %15 : vector<8x384xf32>
    %cst_16 = arith.constant 1.000000e+00 : f32
    %17 = vector.broadcast %cst_16 : f32 to vector<8x384xf32>
    %18 = arith.addf %17, %16 : vector<8x384xf32>
    %19 = arith.divf %17, %18 : vector<8x384xf32>
    %20 = vector.extract_strided_slice %13 {offsets = [0, 384], sizes = [8, 128], strides = [1, 1]} : vector<8x512xf32> to vector<8x128xf32>
    %21 = math.tanh %20 : vector<8x128xf32>
    %22 = vector.extract_strided_slice %19 {offsets = [0, 0], sizes = [8, 128], strides = [1, 1]} : vector<8x384xf32> to vector<8x128xf32>
    %23 = vector.extract_strided_slice %19 {offsets = [0, 128], sizes = [8, 128], strides = [1, 1]} : vector<8x384xf32> to vector<8x128xf32>
    %24 = vector.extract_strided_slice %19 {offsets = [0, 256], sizes = [8, 128], strides = [1, 1]} : vector<8x384xf32> to vector<8x128xf32>
    %25 = arith.mulf %23, %10 : vector<8x128xf32>
    %26 = arith.mulf %22, %21 : vector<8x128xf32>
    %27 = arith.addf %25, %26 : vector<8x128xf32>
    %28 = math.tanh %27 : vector<8x128xf32>
    %29 = arith.mulf %24, %28 : vector<8x128xf32>
    %30 = vector.broadcast %8 : vector<1x128xf32> to vector<8x128xf32>
    %31 = arith.mulf %29, %30 : vector<8x128xf32>
    %cst_17 = arith.constant dense<0.000000e+00> : vector<8xf32>
    %32 = vector.multi_reduction <add>, %31, %cst_17 [1] : vector<8x128xf32> to vector<8xf32>
    %33 = vector.shape_cast %32 : vector<8xf32> to vector<8x1xf32>
    %cst_18 = arith.constant 1.000000e+00 : f32
    %34 = vector.broadcast %cst_18 : f32 to vector<8x1xf32>
    %c8 = arith.constant 8 : index
    %c0_19 = arith.constant 0 : index
    %35 = vector.load %arg10[%c8, %c0_19] : memref<64x512xf32, #tpu.memory_space<vmem>>, vector<8x512xf32>
    %cst_20 = arith.constant dense<0.000000e+00> : vector<8x512xf32>
    %36 = tpu.matmul %29, %7, %cst_20 {dimension_numbers = #tpu.dot_dimension_numbers<[1], [0], [0], [1], [0, 0, 1, 1], [], []>} : vector<8x128xf32>, vector<128x512xf32>, vector<8x512xf32> -> vector<8x512xf32>
    %37 = arith.addf %35, %36 : vector<8x512xf32>
    %38 = vector.extract_strided_slice %37 {offsets = [0, 0], sizes = [8, 384], strides = [1, 1]} : vector<8x512xf32> to vector<8x384xf32>
    %39 = arith.negf %38 : vector<8x384xf32>
    %40 = math.exp %39 : vector<8x384xf32>
    %cst_21 = arith.constant 1.000000e+00 : f32
    %41 = vector.broadcast %cst_21 : f32 to vector<8x384xf32>
    %42 = arith.addf %41, %40 : vector<8x384xf32>
    %43 = arith.divf %41, %42 : vector<8x384xf32>
    %44 = vector.extract_strided_slice %37 {offsets = [0, 384], sizes = [8, 128], strides = [1, 1]} : vector<8x512xf32> to vector<8x128xf32>
    %45 = math.tanh %44 : vector<8x128xf32>
    %46 = vector.extract_strided_slice %43 {offsets = [0, 0], sizes = [8, 128], strides = [1, 1]} : vector<8x384xf32> to vector<8x128xf32>
    %47 = vector.extract_strided_slice %43 {offsets = [0, 128], sizes = [8, 128], strides = [1, 1]} : vector<8x384xf32> to vector<8x128xf32>
    %48 = vector.extract_strided_slice %43 {offsets = [0, 256], sizes = [8, 128], strides = [1, 1]} : vector<8x384xf32> to vector<8x128xf32>
    %49 = arith.mulf %47, %27 : vector<8x128xf32>
    %50 = arith.mulf %46, %45 : vector<8x128xf32>
    %51 = arith.addf %49, %50 : vector<8x128xf32>
    %52 = math.tanh %51 : vector<8x128xf32>
    %53 = arith.mulf %48, %52 : vector<8x128xf32>
    %54 = vector.broadcast %8 : vector<1x128xf32> to vector<8x128xf32>
    %55 = arith.mulf %53, %54 : vector<8x128xf32>
    %cst_22 = arith.constant dense<0.000000e+00> : vector<8xf32>
    %56 = vector.multi_reduction <add>, %55, %cst_22 [1] : vector<8x128xf32> to vector<8xf32>
    %57 = vector.shape_cast %56 : vector<8xf32> to vector<8x1xf32>
    %58 = arith.maximumf %33, %57 : vector<8x1xf32>
    %59 = arith.subf %33, %58 : vector<8x1xf32>
    %60 = math.exp %59 : vector<8x1xf32>
    %61 = arith.subf %57, %58 : vector<8x1xf32>
    %62 = math.exp %61 : vector<8x1xf32>
    %63 = arith.mulf %60, %34 : vector<8x1xf32>
    %64 = arith.addf %63, %62 : vector<8x1xf32>
    %65 = vector.broadcast %60 : vector<8x1xf32> to vector<8x128xf32>
    %66 = arith.mulf %65, %29 : vector<8x128xf32>
    %67 = vector.broadcast %62 : vector<8x1xf32> to vector<8x128xf32>
    %68 = arith.mulf %67, %53 : vector<8x128xf32>
    %69 = arith.addf %66, %68 : vector<8x128xf32>
    %c16 = arith.constant 16 : index
    %c0_23 = arith.constant 0 : index
    %70 = vector.load %arg10[%c16, %c0_23] : memref<64x512xf32, #tpu.memory_space<vmem>>, vector<8x512xf32>
    %cst_24 = arith.constant dense<0.000000e+00> : vector<8x512xf32>
    %71 = tpu.matmul %53, %7, %cst_24 {dimension_numbers = #tpu.dot_dimension_numbers<[1], [0], [0], [1], [0, 0, 1, 1], [], []>} : vector<8x128xf32>, vector<128x512xf32>, vector<8x512xf32> -> vector<8x512xf32>
    %72 = arith.addf %70, %71 : vector<8x512xf32>
    %73 = vector.extract_strided_slice %72 {offsets = [0, 0], sizes = [8, 384], strides = [1, 1]} : vector<8x512xf32> to vector<8x384xf32>
    %74 = arith.negf %73 : vector<8x384xf32>
    %75 = math.exp %74 : vector<8x384xf32>
    %cst_25 = arith.constant 1.000000e+00 : f32
    %76 = vector.broadcast %cst_25 : f32 to vector<8x384xf32>
    %77 = arith.addf %76, %75 : vector<8x384xf32>
    %78 = arith.divf %76, %77 : vector<8x384xf32>
    %79 = vector.extract_strided_slice %72 {offsets = [0, 384], sizes = [8, 128], strides = [1, 1]} : vector<8x512xf32> to vector<8x128xf32>
    %80 = math.tanh %79 : vector<8x128xf32>
    %81 = vector.extract_strided_slice %78 {offsets = [0, 0], sizes = [8, 128], strides = [1, 1]} : vector<8x384xf32> to vector<8x128xf32>
    %82 = vector.extract_strided_slice %78 {offsets = [0, 128], sizes = [8, 128], strides = [1, 1]} : vector<8x384xf32> to vector<8x128xf32>
    %83 = vector.extract_strided_slice %78 {offsets = [0, 256], sizes = [8, 128], strides = [1, 1]} : vector<8x384xf32> to vector<8x128xf32>
    %84 = arith.mulf %82, %51 : vector<8x128xf32>
    %85 = arith.mulf %81, %80 : vector<8x128xf32>
    %86 = arith.addf %84, %85 : vector<8x128xf32>
    %87 = math.tanh %86 : vector<8x128xf32>
    %88 = arith.mulf %83, %87 : vector<8x128xf32>
    %89 = vector.broadcast %8 : vector<1x128xf32> to vector<8x128xf32>
    %90 = arith.mulf %88, %89 : vector<8x128xf32>
    %cst_26 = arith.constant dense<0.000000e+00> : vector<8xf32>
    %91 = vector.multi_reduction <add>, %90, %cst_26 [1] : vector<8x128xf32> to vector<8xf32>
    %92 = vector.shape_cast %91 : vector<8xf32> to vector<8x1xf32>
    %93 = arith.maximumf %58, %92 : vector<8x1xf32>
    %94 = arith.subf %58, %93 : vector<8x1xf32>
    %95 = math.exp %94 : vector<8x1xf32>
    %96 = arith.subf %92, %93 : vector<8x1xf32>
    %97 = math.exp %96 : vector<8x1xf32>
    %98 = arith.mulf %95, %64 : vector<8x1xf32>
    %99 = arith.addf %98, %97 : vector<8x1xf32>
    %100 = vector.broadcast %95 : vector<8x1xf32> to vector<8x128xf32>
    %101 = arith.mulf %100, %69 : vector<8x128xf32>
    %102 = vector.broadcast %97 : vector<8x1xf32> to vector<8x128xf32>
    %103 = arith.mulf %102, %88 : vector<8x128xf32>
    %104 = arith.addf %101, %103 : vector<8x128xf32>
    %c24 = arith.constant 24 : index
    %c0_27 = arith.constant 0 : index
    %105 = vector.load %arg10[%c24, %c0_27] : memref<64x512xf32, #tpu.memory_space<vmem>>, vector<8x512xf32>
    %cst_28 = arith.constant dense<0.000000e+00> : vector<8x512xf32>
    %106 = tpu.matmul %88, %7, %cst_28 {dimension_numbers = #tpu.dot_dimension_numbers<[1], [0], [0], [1], [0, 0, 1, 1], [], []>} : vector<8x128xf32>, vector<128x512xf32>, vector<8x512xf32> -> vector<8x512xf32>
    %107 = arith.addf %105, %106 : vector<8x512xf32>
    %108 = vector.extract_strided_slice %107 {offsets = [0, 0], sizes = [8, 384], strides = [1, 1]} : vector<8x512xf32> to vector<8x384xf32>
    %109 = arith.negf %108 : vector<8x384xf32>
    %110 = math.exp %109 : vector<8x384xf32>
    %cst_29 = arith.constant 1.000000e+00 : f32
    %111 = vector.broadcast %cst_29 : f32 to vector<8x384xf32>
    %112 = arith.addf %111, %110 : vector<8x384xf32>
    %113 = arith.divf %111, %112 : vector<8x384xf32>
    %114 = vector.extract_strided_slice %107 {offsets = [0, 384], sizes = [8, 128], strides = [1, 1]} : vector<8x512xf32> to vector<8x128xf32>
    %115 = math.tanh %114 : vector<8x128xf32>
    %116 = vector.extract_strided_slice %113 {offsets = [0, 0], sizes = [8, 128], strides = [1, 1]} : vector<8x384xf32> to vector<8x128xf32>
    %117 = vector.extract_strided_slice %113 {offsets = [0, 128], sizes = [8, 128], strides = [1, 1]} : vector<8x384xf32> to vector<8x128xf32>
    %118 = vector.extract_strided_slice %113 {offsets = [0, 256], sizes = [8, 128], strides = [1, 1]} : vector<8x384xf32> to vector<8x128xf32>
    %119 = arith.mulf %117, %86 : vector<8x128xf32>
    %120 = arith.mulf %116, %115 : vector<8x128xf32>
    %121 = arith.addf %119, %120 : vector<8x128xf32>
    %122 = math.tanh %121 : vector<8x128xf32>
    %123 = arith.mulf %118, %122 : vector<8x128xf32>
    %124 = vector.broadcast %8 : vector<1x128xf32> to vector<8x128xf32>
    %125 = arith.mulf %123, %124 : vector<8x128xf32>
    %cst_30 = arith.constant dense<0.000000e+00> : vector<8xf32>
    %126 = vector.multi_reduction <add>, %125, %cst_30 [1] : vector<8x128xf32> to vector<8xf32>
    %127 = vector.shape_cast %126 : vector<8xf32> to vector<8x1xf32>
    %128 = arith.maximumf %93, %127 : vector<8x1xf32>
    %129 = arith.subf %93, %128 : vector<8x1xf32>
    %130 = math.exp %129 : vector<8x1xf32>
    %131 = arith.subf %127, %128 : vector<8x1xf32>
    %132 = math.exp %131 : vector<8x1xf32>
    %133 = arith.mulf %130, %99 : vector<8x1xf32>
    %134 = arith.addf %133, %132 : vector<8x1xf32>
    %135 = vector.broadcast %130 : vector<8x1xf32> to vector<8x128xf32>
    %136 = arith.mulf %135, %104 : vector<8x128xf32>
    %137 = vector.broadcast %132 : vector<8x1xf32> to vector<8x128xf32>
    %138 = arith.mulf %137, %123 : vector<8x128xf32>
    %139 = arith.addf %136, %138 : vector<8x128xf32>
    %c32 = arith.constant 32 : index
    %c0_31 = arith.constant 0 : index
    %140 = vector.load %arg10[%c32, %c0_31] : memref<64x512xf32, #tpu.memory_space<vmem>>, vector<8x512xf32>
    %cst_32 = arith.constant dense<0.000000e+00> : vector<8x512xf32>
    %141 = tpu.matmul %123, %7, %cst_32 {dimension_numbers = #tpu.dot_dimension_numbers<[1], [0], [0], [1], [0, 0, 1, 1], [], []>} : vector<8x128xf32>, vector<128x512xf32>, vector<8x512xf32> -> vector<8x512xf32>
    %142 = arith.addf %140, %141 : vector<8x512xf32>
    %143 = vector.extract_strided_slice %142 {offsets = [0, 0], sizes = [8, 384], strides = [1, 1]} : vector<8x512xf32> to vector<8x384xf32>
    %144 = arith.negf %143 : vector<8x384xf32>
    %145 = math.exp %144 : vector<8x384xf32>
    %cst_33 = arith.constant 1.000000e+00 : f32
    %146 = vector.broadcast %cst_33 : f32 to vector<8x384xf32>
    %147 = arith.addf %146, %145 : vector<8x384xf32>
    %148 = arith.divf %146, %147 : vector<8x384xf32>
    %149 = vector.extract_strided_slice %142 {offsets = [0, 384], sizes = [8, 128], strides = [1, 1]} : vector<8x512xf32> to vector<8x128xf32>
    %150 = math.tanh %149 : vector<8x128xf32>
    %151 = vector.extract_strided_slice %148 {offsets = [0, 0], sizes = [8, 128], strides = [1, 1]} : vector<8x384xf32> to vector<8x128xf32>
    %152 = vector.extract_strided_slice %148 {offsets = [0, 128], sizes = [8, 128], strides = [1, 1]} : vector<8x384xf32> to vector<8x128xf32>
    %153 = vector.extract_strided_slice %148 {offsets = [0, 256], sizes = [8, 128], strides = [1, 1]} : vector<8x384xf32> to vector<8x128xf32>
    %154 = arith.mulf %152, %121 : vector<8x128xf32>
    %155 = arith.mulf %151, %150 : vector<8x128xf32>
    %156 = arith.addf %154, %155 : vector<8x128xf32>
    %157 = math.tanh %156 : vector<8x128xf32>
    %158 = arith.mulf %153, %157 : vector<8x128xf32>
    %159 = vector.broadcast %8 : vector<1x128xf32> to vector<8x128xf32>
    %160 = arith.mulf %158, %159 : vector<8x128xf32>
    %cst_34 = arith.constant dense<0.000000e+00> : vector<8xf32>
    %161 = vector.multi_reduction <add>, %160, %cst_34 [1] : vector<8x128xf32> to vector<8xf32>
    %162 = vector.shape_cast %161 : vector<8xf32> to vector<8x1xf32>
    %163 = arith.maximumf %128, %162 : vector<8x1xf32>
    %164 = arith.subf %128, %163 : vector<8x1xf32>
    %165 = math.exp %164 : vector<8x1xf32>
    %166 = arith.subf %162, %163 : vector<8x1xf32>
    %167 = math.exp %166 : vector<8x1xf32>
    %168 = arith.mulf %165, %134 : vector<8x1xf32>
    %169 = arith.addf %168, %167 : vector<8x1xf32>
    %170 = vector.broadcast %165 : vector<8x1xf32> to vector<8x128xf32>
    %171 = arith.mulf %170, %139 : vector<8x128xf32>
    %172 = vector.broadcast %167 : vector<8x1xf32> to vector<8x128xf32>
    %173 = arith.mulf %172, %158 : vector<8x128xf32>
    %174 = arith.addf %171, %173 : vector<8x128xf32>
    %c40 = arith.constant 40 : index
    %c0_35 = arith.constant 0 : index
    %175 = vector.load %arg10[%c40, %c0_35] : memref<64x512xf32, #tpu.memory_space<vmem>>, vector<8x512xf32>
    %cst_36 = arith.constant dense<0.000000e+00> : vector<8x512xf32>
    %176 = tpu.matmul %158, %7, %cst_36 {dimension_numbers = #tpu.dot_dimension_numbers<[1], [0], [0], [1], [0, 0, 1, 1], [], []>} : vector<8x128xf32>, vector<128x512xf32>, vector<8x512xf32> -> vector<8x512xf32>
    %177 = arith.addf %175, %176 : vector<8x512xf32>
    %178 = vector.extract_strided_slice %177 {offsets = [0, 0], sizes = [8, 384], strides = [1, 1]} : vector<8x512xf32> to vector<8x384xf32>
    %179 = arith.negf %178 : vector<8x384xf32>
    %180 = math.exp %179 : vector<8x384xf32>
    %cst_37 = arith.constant 1.000000e+00 : f32
    %181 = vector.broadcast %cst_37 : f32 to vector<8x384xf32>
    %182 = arith.addf %181, %180 : vector<8x384xf32>
    %183 = arith.divf %181, %182 : vector<8x384xf32>
    %184 = vector.extract_strided_slice %177 {offsets = [0, 384], sizes = [8, 128], strides = [1, 1]} : vector<8x512xf32> to vector<8x128xf32>
    %185 = math.tanh %184 : vector<8x128xf32>
    %186 = vector.extract_strided_slice %183 {offsets = [0, 0], sizes = [8, 128], strides = [1, 1]} : vector<8x384xf32> to vector<8x128xf32>
    %187 = vector.extract_strided_slice %183 {offsets = [0, 128], sizes = [8, 128], strides = [1, 1]} : vector<8x384xf32> to vector<8x128xf32>
    %188 = vector.extract_strided_slice %183 {offsets = [0, 256], sizes = [8, 128], strides = [1, 1]} : vector<8x384xf32> to vector<8x128xf32>
    %189 = arith.mulf %187, %156 : vector<8x128xf32>
    %190 = arith.mulf %186, %185 : vector<8x128xf32>
    %191 = arith.addf %189, %190 : vector<8x128xf32>
    %192 = math.tanh %191 : vector<8x128xf32>
    %193 = arith.mulf %188, %192 : vector<8x128xf32>
    %194 = vector.broadcast %8 : vector<1x128xf32> to vector<8x128xf32>
    %195 = arith.mulf %193, %194 : vector<8x128xf32>
    %cst_38 = arith.constant dense<0.000000e+00> : vector<8xf32>
    %196 = vector.multi_reduction <add>, %195, %cst_38 [1] : vector<8x128xf32> to vector<8xf32>
    %197 = vector.shape_cast %196 : vector<8xf32> to vector<8x1xf32>
    %198 = arith.maximumf %163, %197 : vector<8x1xf32>
    %199 = arith.subf %163, %198 : vector<8x1xf32>
    %200 = math.exp %199 : vector<8x1xf32>
    %201 = arith.subf %197, %198 : vector<8x1xf32>
    %202 = math.exp %201 : vector<8x1xf32>
    %203 = arith.mulf %200, %169 : vector<8x1xf32>
    %204 = arith.addf %203, %202 : vector<8x1xf32>
    %205 = vector.broadcast %200 : vector<8x1xf32> to vector<8x128xf32>
    %206 = arith.mulf %205, %174 : vector<8x128xf32>
    %207 = vector.broadcast %202 : vector<8x1xf32> to vector<8x128xf32>
    %208 = arith.mulf %207, %193 : vector<8x128xf32>
    %209 = arith.addf %206, %208 : vector<8x128xf32>
    %c48 = arith.constant 48 : index
    %c0_39 = arith.constant 0 : index
    %210 = vector.load %arg10[%c48, %c0_39] : memref<64x512xf32, #tpu.memory_space<vmem>>, vector<8x512xf32>
    %cst_40 = arith.constant dense<0.000000e+00> : vector<8x512xf32>
    %211 = tpu.matmul %193, %7, %cst_40 {dimension_numbers = #tpu.dot_dimension_numbers<[1], [0], [0], [1], [0, 0, 1, 1], [], []>} : vector<8x128xf32>, vector<128x512xf32>, vector<8x512xf32> -> vector<8x512xf32>
    %212 = arith.addf %210, %211 : vector<8x512xf32>
    %213 = vector.extract_strided_slice %212 {offsets = [0, 0], sizes = [8, 384], strides = [1, 1]} : vector<8x512xf32> to vector<8x384xf32>
    %214 = arith.negf %213 : vector<8x384xf32>
    %215 = math.exp %214 : vector<8x384xf32>
    %cst_41 = arith.constant 1.000000e+00 : f32
    %216 = vector.broadcast %cst_41 : f32 to vector<8x384xf32>
    %217 = arith.addf %216, %215 : vector<8x384xf32>
    %218 = arith.divf %216, %217 : vector<8x384xf32>
    %219 = vector.extract_strided_slice %212 {offsets = [0, 384], sizes = [8, 128], strides = [1, 1]} : vector<8x512xf32> to vector<8x128xf32>
    %220 = math.tanh %219 : vector<8x128xf32>
    %221 = vector.extract_strided_slice %218 {offsets = [0, 0], sizes = [8, 128], strides = [1, 1]} : vector<8x384xf32> to vector<8x128xf32>
    %222 = vector.extract_strided_slice %218 {offsets = [0, 128], sizes = [8, 128], strides = [1, 1]} : vector<8x384xf32> to vector<8x128xf32>
    %223 = vector.extract_strided_slice %218 {offsets = [0, 256], sizes = [8, 128], strides = [1, 1]} : vector<8x384xf32> to vector<8x128xf32>
    %224 = arith.mulf %222, %191 : vector<8x128xf32>
    %225 = arith.mulf %221, %220 : vector<8x128xf32>
    %226 = arith.addf %224, %225 : vector<8x128xf32>
    %227 = math.tanh %226 : vector<8x128xf32>
    %228 = arith.mulf %223, %227 : vector<8x128xf32>
    %229 = vector.broadcast %8 : vector<1x128xf32> to vector<8x128xf32>
    %230 = arith.mulf %228, %229 : vector<8x128xf32>
    %cst_42 = arith.constant dense<0.000000e+00> : vector<8xf32>
    %231 = vector.multi_reduction <add>, %230, %cst_42 [1] : vector<8x128xf32> to vector<8xf32>
    %232 = vector.shape_cast %231 : vector<8xf32> to vector<8x1xf32>
    %233 = arith.maximumf %198, %232 : vector<8x1xf32>
    %234 = arith.subf %198, %233 : vector<8x1xf32>
    %235 = math.exp %234 : vector<8x1xf32>
    %236 = arith.subf %232, %233 : vector<8x1xf32>
    %237 = math.exp %236 : vector<8x1xf32>
    %238 = arith.mulf %235, %204 : vector<8x1xf32>
    %239 = arith.addf %238, %237 : vector<8x1xf32>
    %240 = vector.broadcast %235 : vector<8x1xf32> to vector<8x128xf32>
    %241 = arith.mulf %240, %209 : vector<8x128xf32>
    %242 = vector.broadcast %237 : vector<8x1xf32> to vector<8x128xf32>
    %243 = arith.mulf %242, %228 : vector<8x128xf32>
    %244 = arith.addf %241, %243 : vector<8x128xf32>
    %c56 = arith.constant 56 : index
    %c0_43 = arith.constant 0 : index
    %245 = vector.load %arg10[%c56, %c0_43] : memref<64x512xf32, #tpu.memory_space<vmem>>, vector<8x512xf32>
    %cst_44 = arith.constant dense<0.000000e+00> : vector<8x512xf32>
    %246 = tpu.matmul %228, %7, %cst_44 {dimension_numbers = #tpu.dot_dimension_numbers<[1], [0], [0], [1], [0, 0, 1, 1], [], []>} : vector<8x128xf32>, vector<128x512xf32>, vector<8x512xf32> -> vector<8x512xf32>
    %247 = arith.addf %245, %246 : vector<8x512xf32>
    %248 = vector.extract_strided_slice %247 {offsets = [0, 0], sizes = [8, 384], strides = [1, 1]} : vector<8x512xf32> to vector<8x384xf32>
    %249 = arith.negf %248 : vector<8x384xf32>
    %250 = math.exp %249 : vector<8x384xf32>
    %cst_45 = arith.constant 1.000000e+00 : f32
    %251 = vector.broadcast %cst_45 : f32 to vector<8x384xf32>
    %252 = arith.addf %251, %250 : vector<8x384xf32>
    %253 = arith.divf %251, %252 : vector<8x384xf32>
    %254 = vector.extract_strided_slice %247 {offsets = [0, 384], sizes = [8, 128], strides = [1, 1]} : vector<8x512xf32> to vector<8x128xf32>
    %255 = math.tanh %254 : vector<8x128xf32>
    %256 = vector.extract_strided_slice %253 {offsets = [0, 0], sizes = [8, 128], strides = [1, 1]} : vector<8x384xf32> to vector<8x128xf32>
    %257 = vector.extract_strided_slice %253 {offsets = [0, 128], sizes = [8, 128], strides = [1, 1]} : vector<8x384xf32> to vector<8x128xf32>
    %258 = vector.extract_strided_slice %253 {offsets = [0, 256], sizes = [8, 128], strides = [1, 1]} : vector<8x384xf32> to vector<8x128xf32>
    %259 = arith.mulf %257, %226 : vector<8x128xf32>
    %260 = arith.mulf %256, %255 : vector<8x128xf32>
    %261 = arith.addf %259, %260 : vector<8x128xf32>
    %262 = math.tanh %261 : vector<8x128xf32>
    %263 = arith.mulf %258, %262 : vector<8x128xf32>
    %264 = vector.broadcast %8 : vector<1x128xf32> to vector<8x128xf32>
    %265 = arith.mulf %263, %264 : vector<8x128xf32>
    %cst_46 = arith.constant dense<0.000000e+00> : vector<8xf32>
    %266 = vector.multi_reduction <add>, %265, %cst_46 [1] : vector<8x128xf32> to vector<8xf32>
    %267 = vector.shape_cast %266 : vector<8xf32> to vector<8x1xf32>
    %268 = arith.maximumf %233, %267 : vector<8x1xf32>
    %269 = arith.subf %233, %268 : vector<8x1xf32>
    %270 = math.exp %269 : vector<8x1xf32>
    %271 = arith.subf %267, %268 : vector<8x1xf32>
    %272 = math.exp %271 : vector<8x1xf32>
    %273 = arith.mulf %270, %239 : vector<8x1xf32>
    %274 = arith.addf %273, %272 : vector<8x1xf32>
    %275 = vector.broadcast %270 : vector<8x1xf32> to vector<8x128xf32>
    %276 = arith.mulf %275, %244 : vector<8x128xf32>
    %277 = vector.broadcast %272 : vector<8x1xf32> to vector<8x128xf32>
    %278 = arith.mulf %277, %263 : vector<8x128xf32>
    %279 = arith.addf %276, %278 : vector<8x128xf32>
    %280 = tpu.reciprocal %274 : vector<8x1xf32> -> vector<8x1xf32>
    %281 = vector.broadcast %280 : vector<8x1xf32> to vector<8x128xf32>
    %282 = arith.mulf %279, %281 : vector<8x128xf32>
    %c0_47 = arith.constant 0 : index
    %c0_48 = arith.constant 0 : index
    %283 = vector.load %arg6[%c0_47, %c0_48] : memref<128x32xf32, #tpu.memory_space<vmem>>, vector<128x32xf32>
    %cst_49 = arith.constant dense<0.000000e+00> : vector<8x32xf32>
    %284 = tpu.matmul %282, %283, %cst_49 {dimension_numbers = #tpu.dot_dimension_numbers<[1], [0], [0], [1], [0, 0, 1, 1], [], []>} : vector<8x128xf32>, vector<128x32xf32>, vector<8x32xf32> -> vector<8x32xf32>
    %c0_50 = arith.constant 0 : index
    %c0_51 = arith.constant 0 : index
    %285 = vector.load %arg1[%c0_50, %c0_51] : memref<8x4xf32, #tpu.memory_space<vmem>>, vector<8x4xf32>
    %c0_52 = arith.constant 0 : index
    %c0_53 = arith.constant 0 : index
    %286 = vector.load %arg7[%c0_52, %c0_53] : memref<4x32xf32, #tpu.memory_space<vmem>>, vector<4x32xf32>
    %cst_54 = arith.constant dense<0.000000e+00> : vector<8x32xf32>
    %287 = tpu.matmul %285, %286, %cst_54 {dimension_numbers = #tpu.dot_dimension_numbers<[1], [0], [0], [1], [0, 0, 1, 1], [], []>} : vector<8x4xf32>, vector<4x32xf32>, vector<8x32xf32> -> vector<8x32xf32>
    %288 = arith.addf %284, %287 : vector<8x32xf32>
    %c0_55 = arith.constant 0 : index
    %c0_56 = arith.constant 0 : index
    %289 = vector.load %arg8[%c0_55, %c0_56] : memref<1x32xf32, #tpu.memory_space<vmem>>, vector<1x32xf32>
    %290 = vector.broadcast %289 : vector<1x32xf32> to vector<8x32xf32>
    %291 = arith.addf %288, %290 : vector<8x32xf32>
    %c0_57 = arith.constant 0 : index
    %c0_58 = arith.constant 0 : index
    %292 = vector.load %arg9[%c0_57, %c0_58] : memref<8x32xf32, #tpu.memory_space<vmem>>, vector<8x32xf32>
    tpu.vector_store %arg9[%c0_57, %c0_58], %291 {strides = array<i32>} : memref<8x32xf32, #tpu.memory_space<vmem>>, vector<8x32xf32>,
    return
  }
}

</mosaic_0001>

<bundles_post_ra>
// kernel: tpu_custom_call.1
= control target key start
LH: loop header
LB: loop body
LE: loop exit
PB: predicated region body
PF: predicated region fallthrough
CT: control target
= control target key end

     0   :  { %14 = vsyncpa [#allocation4], 0  ;;  %s3718_s0 = inlined_call_operand.vmem [shape: f32[64,16], index: 0, kind: input, shape index: {}]   ;;  %s3719_s1 = inlined_call_operand.vmem [shape: f32[8,4], index: 1, kind: input, shape index: {}]   ;;  %s3720_s2 = inlined_call_operand.vmem [shape: f32[16,512], index: 2, kind: input, shape index: {}]   ;;  %s3721_s3 = inlined_call_operand.hbm [shape: f32[128,512], index: 3, kind: input, shape index: {}]   ;;  %s3722_s4 = inlined_call_operand.vmem [shape: f32[1,512], index: 4, kind: input, shape index: {}]   ;;  %s3723_s5 = inlined_call_operand.vmem [shape: f32[1,128], index: 5, kind: input, shape index: {}]   ;;  %s3724_s6 = inlined_call_operand.vmem [shape: f32[128,32], index: 6, kind: input, shape index: {}]   ;;  %s3725_s7 = inlined_call_operand.vmem [shape: f32[4,32], index: 7, kind: input, shape index: {}]   ;;  %s3726_s8 = inlined_call_operand.vmem [shape: f32[1,32], index: 8, kind: input, shape index: {}]   ;;  %s3727_s9 = inlined_call_operand.hbm [shape: f32[8,32], index: 9, kind: output, shape index: {}]  }
   0x1   :  { %15 = vsyncpa [#allocation5], 0  ;;  %s2507_s30 = smov [#allocation3]  }
   0x2   :  { %s27_s10 = sshll.u32 %s2507_s30, 4  ;;  %s28_s10 = int_to_ptr.vmem [resolvable:$true] %s27_s10 }
   0x3   :  { %s2471_s11 = scalar_lea.vmem %s28_s10, 8192  ;;  %p2476_p1 = scmp.lt.s32.totalorder %s28_s10, %s28_s10 }
   0x4   :  { %p2472_p0 = scmp.ne.s32.totalorder %s28_s10, %s2471_s11  ;;  %p2477_p2 = scmp.lt.s32.totalorder %s2471_s11, %s2471_s11 }
   0x6   :  { %p2478_p3 = por %p2477_p2, %p2476_p1 }
   0x8   :  { %p2479_p4 = pnand %p2478_p3, %p2472_p0 }
   0xa   :  { %2482 = shalt.err (!%p2479_p4)
}
   0xb   :  { %s2508_s12 = smov 512   ;;  %s2509_s13 = smov 32  }
   0xc   :  { %33 = dma.hbm_to_vmem [thread:$0]  %s3721_s3, 8192, %s28_s10, [#allocation4], %s2508_s12, %s2508_s12, %s2509_s13  }
   0xd   :  { %2503 = dma.done.wait [#allocation4], 8192  }
   0xe   :  { %2504 = vsyncadd [#allocation4], 4294959104  ;;  %v3728_v0 = vmov 0.0   ;;  %v60_v1 = vld [vmem:[%s3720_s2 + $0x28] sm:$0xff]  ;;  %v62_v2 = vld [vmem:[%s3720_s2 + $0x38] sm:$0xff]  ;;  %vm85_vm0 = vcmask 130048  }
   0xf   :  { %174 = vmatprep.mubr.f32.mxu0 %v3728_v0  ;;  %287 = vmatprep.mubr.f32.mxu1 %v3728_v0  ;;  %v59_v3 = vld [vmem:[%s3720_s2 + $0x20] sm:$0xff]  ;;  %v61_v4 = vld [vmem:[%s3720_s2 + $0x30] sm:$0xff]  ;;  %v56_v5 = vld [vmem:[%s3720_s2 + $0x8] sm:$0xff]  ;;  %vm1962_vm1 = vcmask 1043456   ;;  %vm2511_vm2 = vmmov 0   ;;  %vm1958_vm3 = vcmask 31744  }
  0x10   :  { %138 = vmatprep.subr.mxu0 %v60_v1  ;;  %251 = vmatprep.subr.mxu1 %v62_v2  ;;  %v58_v6 = vld [vmem:[%s3720_s2 + $0x18] sm:$0xff]  ;;  %v55_v7 = vld [vmem:[%s3720_s2] sm:$0xff]  ;;  %v57_v8 = vld [vmem:[%s3720_s2 + $0x10] sm:$0xff]  ;;  %s2512_s14 = smov [#allocation6]   ;;  %vm2114_vm4 = vcmask 261120  }
  0x11   :  { %139 = vmatpush1.msra.mxu0 %v59_v3  ;;  %252 = vmatpush1.msra.mxu1 %v61_v4  ;;  %v47_v9 = vld [vmem:[%s3718_s0] sm:$0xff]  ;;  %v2595_v10 = vld [vmem:[#allocation3 + $0x1e8] sm:$0xff]  ;;  %v2597_v11 = vld [vmem:[#allocation3 + $0x1f8] sm:$0xff]  ;;  %s2122_s15 = sshll.u32 %s2512_s14, 4  ;;  %s2123_s15 = int_to_ptr.vmem [resolvable:$true] %s2122_s15 }
  0x12   :  { %140 = vmatprep.subr.mxu0 %v56_v5  ;;  %253 = vmatprep.subr.mxu1 %v58_v6  ;;  %3825 = vst [vmem:[#allocation9_spill] sm:$0xff] %v2595_v10  ;;  %3826 = vst [vmem:[#allocation10_spill] sm:$0xff] %v2597_v11  ;;  %v2599_v12 = vld [vmem:[#allocation3 + $0x1e0] sm:$0xff]  ;;  %v2601_v13 = vld [vmem:[#allocation3 + $0x1f0] sm:$0xff]  ;;  %s2483_s16 = scalar_lea.vmem %s2123_s15, 128  ;;  %p2488_p6 = scmp.lt.s32.totalorder %s2123_s15, %s2123_s15 }
  0x13   :  { %141 = vmatpush1.msra.mxu0 %v55_v7  ;;  %254 = vmatpush1.msra.mxu1 %v57_v8  ;;  %v2605_v14 = vld [vmem:[#allocation3 + $0x1c8] sm:$0xff]  ;;  %v2607_v15 = vld [vmem:[#allocation3 + $0x1d8] sm:$0xff]  ;;  %v2613_v16 = vld [vmem:[#allocation3 + $0x1c0] sm:$0xff]  ;;  %p2484_p5 = scmp.ne.s32.totalorder %s2123_s15, %s2483_s16  ;;  %p2489_p7 = scmp.lt.s32.totalorder %s2483_s16, %s2483_s16 }
  0x14   :  { %2131 = vmatmul.mubr.msk.f32.vlgmr.msra.gmra.mxu0 %vm85_vm0, %v47_v9  ;;  %2139 = vmatmul.mubr.msk.f32.vlgmr.msra.gmra.mxu1 %vm85_vm0, %v47_v9  ;;  %v2615_v17 = vld [vmem:[#allocation3 + $0x1d0] sm:$0xff]  ;;  %v48_v18 = vld [vmem:[%s3718_s0 + $0x8] sm:$0xff]  ;;  %v2626_v20 = vld [vmem:[#allocation3 + $0x1b8] sm:$0xff] }
  0x15   :  { %437 = vmatprep.subr.mxu0 %v2595_v10  ;;  %508 = vmatprep.subr.mxu1 %v2597_v11  ;;  %v2624_v19 = vld [vmem:[#allocation3 + $0x1a8] sm:$0xff]  ;;  %v2630_v21 = vld [vmem:[#allocation3 + $0x1a0] sm:$0xff]  ;;  %v2632_v22 = vld [vmem:[#allocation3 + $0x1b0] sm:$0xff]  ;;  %p2490_p8 = por %p2489_p7, %p2488_p6 }
  0x16   :  { %438 = vmatpush1.msra.mxu0 %v2599_v12  ;;  %509 = vmatpush1.msra.mxu1 %v2601_v13  ;;  %v2636_v23 = vld [vmem:[#allocation3 + $0x188] sm:$0xff]  ;;  %v2638_v24 = vld [vmem:[#allocation3 + $0x198] sm:$0xff]  ;;  %v2644_v25 = vld [vmem:[#allocation3 + $0x180] sm:$0xff] }
  0x17   :  { %439 = vmatprep.subr.mxu0 %v2605_v14  ;;  %510 = vmatprep.subr.mxu1 %v2607_v15  ;;  %v2646_v26 = vld [vmem:[#allocation3 + $0x190] sm:$0xff]  ;;  %v2655_v28 = vld [vmem:[#allocation3 + $0x168] sm:$0xff]  ;;  %v2657_v29 = vld [vmem:[#allocation3 + $0x178] sm:$0xff]  ;;  %p2491_p9 = pnand %p2490_p8, %p2484_p5 }
  0x18   :  { %180 = vmatprep.mubr.f32.mxu0 %v3728_v0  ;;  %293 = vmatprep.mubr.f32.mxu1 %v3728_v0  ;;  %v49_v27 = vld [vmem:[%s3718_s0 + $0x10] sm:$0xff]  ;;  %v2661_v30 = vld [vmem:[#allocation3 + $0x160] sm:$0xff]  ;;  %v2667_v32 = vld [vmem:[#allocation3 + $0x148] sm:$0xff] }
  0x19   :  { %440 = vmatpush1.msra.mxu0 %v2613_v16  ;;  %511 = vmatpush1.msra.mxu1 %v2615_v17  ;;  %v2663_v31 = vld [vmem:[#allocation3 + $0x170] sm:$0xff]  ;;  %v2669_v33 = vld [vmem:[#allocation3 + $0x158] sm:$0xff]  ;;  %v2675_v34 = vld [vmem:[#allocation3 + $0x140] sm:$0xff] }
  0x1a   :  { %2132 = vmatmul.mubr.msk.f32.gmra.mxu0 %vm85_vm0, %v48_v18  ;;  %2140 = vmatmul.mubr.msk.f32.gmra.mxu1 %vm85_vm0, %v48_v18  ;;  %v2677_v35 = vld [vmem:[#allocation3 + $0x150] sm:$0xff]  ;;  %v50_v36 = vld [vmem:[%s3718_s0 + $0x18] sm:$0xff]  ;;  %v2686_v37 = vld [vmem:[#allocation3 + $0x128] sm:$0xff] }
  0x1b   :  { %441 = vmatprep.subr.mxu0 %v2624_v19  ;;  %512 = vmatprep.subr.mxu1 %v2626_v20  ;;  %v2688_v38 = vld [vmem:[#allocation3 + $0x138] sm:$0xff]  ;;  %v2692_v39 = vld [vmem:[#allocation3 + $0x120] sm:$0xff]  ;;  %v2694_v40 = vld [vmem:[#allocation3 + $0x130] sm:$0xff] }
  0x1c   :  { %442 = vmatpush1.msra.mxu0 %v2630_v21  ;;  %513 = vmatpush1.msra.mxu1 %v2632_v22  ;;  %v2698_v41 = vld [vmem:[#allocation3 + $0x108] sm:$0xff]  ;;  %v2700_v42 = vld [vmem:[#allocation3 + $0x118] sm:$0xff]  ;;  %v2706_v43 = vld [vmem:[#allocation3 + $0x100] sm:$0xff] }
  0x1d   :  { %443 = vmatprep.subr.mxu0 %v2636_v23  ;;  %514 = vmatprep.subr.mxu1 %v2638_v24  ;;  %v2708_v44 = vld [vmem:[#allocation3 + $0x110] sm:$0xff]  ;;  %v51_v45 = vld [vmem:[%s3718_s0 + $0x20] sm:$0xff]  ;;  %v2717_v46 = vld [vmem:[#allocation3 + $0xe8] sm:$0xff] }
  0x1e   :  { %186 = vmatprep.mubr.f32.mxu0 %v3728_v0  ;;  %299 = vmatprep.mubr.f32.mxu1 %v3728_v0  ;;  %v2719_v47 = vld [vmem:[#allocation3 + $0xf8] sm:$0xff]  ;;  %v2723_v48 = vld [vmem:[#allocation3 + $0xe0] sm:$0xff]  ;;  %v2725_v49 = vld [vmem:[#allocation3 + $0xf0] sm:$0xff] }
  0x1f   :  { %444 = vmatpush1.msra.mxu0 %v2644_v25  ;;  %515 = vmatpush1.msra.mxu1 %v2646_v26  ;;  %v2729_v50 = vld [vmem:[#allocation3 + $0xc8] sm:$0xff]  ;;  %v2731_v51 = vld [vmem:[#allocation3 + $0xd8] sm:$0xff]  ;;  %v2737_v52 = vld [vmem:[#allocation3 + $0xc0] sm:$0xff] }
  0x20   :  { %2133 = vmatmul.mubr.msk.f32.gmra.mxu0 %vm85_vm0, %v49_v27  ;;  %2141 = vmatmul.mubr.msk.f32.gmra.mxu1 %vm85_vm0, %v49_v27  ;;  %v2739_v53 = vld [vmem:[#allocation3 + $0xd0] sm:$0xff]  ;;  %v52_v54 = vld [vmem:[%s3718_s0 + $0x28] sm:$0xff]  ;;  %v2750_v56 = vld [vmem:[#allocation3 + $0xb8] sm:$0xff] }
  0x21   :  { %445 = vmatprep.subr.mxu0 %v2655_v28  ;;  %516 = vmatprep.subr.mxu1 %v2657_v29  ;;  %v2748_v55 = vld [vmem:[#allocation3 + $0xa8] sm:$0xff]  ;;  %v2754_v57 = vld [vmem:[#allocation3 + $0xa0] sm:$0xff]  ;;  %v2756_v58 = vld [vmem:[#allocation3 + $0xb0] sm:$0xff] }
  0x22   :  { %446 = vmatpush1.msra.mxu0 %v2661_v30  ;;  %517 = vmatpush1.msra.mxu1 %v2663_v31  ;;  %v2760_v59 = vld [vmem:[#allocation3 + $0x88] sm:$0xff]  ;;  %v2762_v60 = vld [vmem:[#allocation3 + $0x98] sm:$0xff]  ;;  %v2768_v61 = vld [vmem:[#allocation3 + $0x80] sm:$0xff] }
  0x23   :  { %447 = vmatprep.subr.mxu0 %v2667_v32  ;;  %518 = vmatprep.subr.mxu1 %v2669_v33  ;;  %3827 = vst [vmem:[#allocation11_spill] sm:$0xff] %v2760_v59  ;;  %3828 = vst [vmem:[#allocation12_spill] sm:$0xff] %v2762_v60  ;;  %v2770_v62 = vld [vmem:[#allocation3 + $0x90] sm:$0xff]  ;;  %v2779_v1 = vld [vmem:[#allocation3 + $0x68] sm:$0xff] }
  0x24   :  { %192 = vmatprep.mubr.f32.mxu0 %v3728_v0  ;;  %305 = vmatprep.mubr.f32.mxu1 %v3728_v0  ;;  %3829 = vst [vmem:[#allocation13_spill] sm:$0xff] %v2768_v61  ;;  %3830 = vst [vmem:[#allocation14_spill] sm:$0xff] %v2770_v62  ;;  %v53_v63 = vld [vmem:[%s3718_s0 + $0x30] sm:$0xff]  ;;  %v2781_v2 = vld [vmem:[#allocation3 + $0x78] sm:$0xff] }
  0x25   :  { %448 = vmatpush1.msra.mxu0 %v2675_v34  ;;  %519 = vmatpush1.msra.mxu1 %v2677_v35  ;;  %3831 = vst [vmem:[#allocation15_spill] sm:$0xff] %v2779_v1  ;;  %3832 = vst [vmem:[#allocation16_spill] sm:$0xff] %v2781_v2  ;;  %v2785_v3 = vld [vmem:[#allocation3 + $0x60] sm:$0xff]  ;;  %v2787_v4 = vld [vmem:[#allocation3 + $0x70] sm:$0xff] }
  0x26   :  { %2134 = vmatmul.mubr.msk.f32.gmra.mxu0 %vm85_vm0, %v50_v36  ;;  %2142 = vmatmul.mubr.msk.f32.gmra.mxu1 %vm85_vm0, %v50_v36  ;;  %3833 = vst [vmem:[#allocation17_spill] sm:$0xff] %v2785_v3  ;;  %3834 = vst [vmem:[#allocation18_spill] sm:$0xff] %v2787_v4  ;;  %v2791_v5 = vld [vmem:[#allocation3 + $0x48] sm:$0xff]  ;;  %v2793_v6 = vld [vmem:[#allocation3 + $0x58] sm:$0xff] }
  0x27   :  { %449 = vmatprep.subr.mxu0 %v2686_v37  ;;  %520 = vmatprep.subr.mxu1 %v2688_v38  ;;  %3835 = vst [vmem:[#allocation19_spill] sm:$0xff] %v2791_v5  ;;  %3836 = vst [vmem:[#allocation20_spill] sm:$0xff] %v2793_v6  ;;  %v2799_v7 = vld [vmem:[#allocation3 + $0x40] sm:$0xff]  ;;  %v2801_v8 = vld [vmem:[#allocation3 + $0x50] sm:$0xff] }
  0x28   :  { %450 = vmatpush1.msra.mxu0 %v2692_v39  ;;  %521 = vmatpush1.msra.mxu1 %v2694_v40  ;;  %3837 = vst [vmem:[#allocation21_spill] sm:$0xff] %v2799_v7  ;;  %3838 = vst [vmem:[#allocation22_spill] sm:$0xff] %v2801_v8  ;;  %v54_v9 = vld [vmem:[%s3718_s0 + $0x38] sm:$0xff]  ;;  %v2810_v18 = vld [vmem:[#allocation3 + $0x28] sm:$0xff] }
  0x29   :  { %451 = vmatprep.subr.mxu0 %v2698_v41  ;;  %522 = vmatprep.subr.mxu1 %v2700_v42  ;;  %3839 = vst [vmem:[#allocation23_spill] sm:$0xff] %v2810_v18  ;;  %v2812_v27 = vld [vmem:[#allocation3 + $0x38] sm:$0xff]  ;;  %v2816_v36 = vld [vmem:[#allocation3 + $0x20] sm:$0xff] }
  0x2a   :  { %198 = vmatprep.mubr.f32.mxu0 %v3728_v0  ;;  %311 = vmatprep.mubr.f32.mxu1 %v3728_v0  ;;  %3840 = vst [vmem:[#allocation24_spill] sm:$0xff] %v2812_v27  ;;  %3841 = vst [vmem:[#allocation25_spill] sm:$0xff] %v2816_v36 }
  0x2b   :  { %452 = vmatpush1.msra.mxu0 %v2706_v43  ;;  %523 = vmatpush1.msra.mxu1 %v2708_v44 }
  0x2c   :  { %2135 = vmatmul.mubr.msk.f32.gmra.mxu0 %vm85_vm0, %v51_v45  ;;  %2143 = vmatmul.mubr.msk.f32.gmra.mxu1 %vm85_vm0, %v51_v45  ;;  %v2818_v45 = vld [vmem:[#allocation3 + $0x30] sm:$0xff] }
  0x2d   :  { %453 = vmatprep.subr.mxu0 %v2717_v46  ;;  %524 = vmatprep.subr.mxu1 %v2719_v47  ;;  %3842 = vst [vmem:[#allocation26_spill] sm:$0xff] %v2818_v45 }
  0x2e   :  { %454 = vmatpush1.msra.mxu0 %v2723_v48  ;;  %525 = vmatpush1.msra.mxu1 %v2725_v49 }
  0x2f   :  { %455 = vmatprep.subr.mxu0 %v2729_v50  ;;  %526 = vmatprep.subr.mxu1 %v2731_v51 }
  0x30   :  { %204 = vmatprep.mubr.f32.mxu0 %v3728_v0  ;;  %317 = vmatprep.mubr.f32.mxu1 %v3728_v0 }
  0x31   :  { %456 = vmatpush1.msra.mxu0 %v2737_v52  ;;  %527 = vmatpush1.msra.mxu1 %v2739_v53 }
  0x32   :  { %2136 = vmatmul.mubr.msk.f32.gmra.mxu0 %vm85_vm0, %v52_v54  ;;  %2144 = vmatmul.mubr.msk.f32.gmra.mxu1 %vm85_vm0, %v52_v54  ;;  %v2822_v54 = vld [vmem:[#allocation3 + $0x8] sm:$0xff] }
  0x33   :  { %457 = vmatprep.subr.mxu0 %v2748_v55  ;;  %528 = vmatprep.subr.mxu1 %v2750_v56  ;;  %3843 = vst [vmem:[#allocation27_spill] sm:$0xff] %v2822_v54 }
  0x34   :  { %458 = vmatpush1.msra.mxu0 %v2754_v57  ;;  %529 = vmatpush1.msra.mxu1 %v2756_v58 }
  0x35   :  { %459 = vmatprep.subr.mxu0 %v2760_v59  ;;  %530 = vmatprep.subr.mxu1 %v2762_v60 }
  0x36   :  { %210 = vmatprep.mubr.f32.mxu0 %v3728_v0  ;;  %323 = vmatprep.mubr.f32.mxu1 %v3728_v0 }
  0x37   :  { %460 = vmatpush1.msra.mxu0 %v2768_v61  ;;  %531 = vmatpush1.msra.mxu1 %v2770_v62 }
  0x38   :  { %2137 = vmatmul.mubr.msk.f32.gmra.mxu0 %vm85_vm0, %v53_v63  ;;  %2145 = vmatmul.mubr.msk.f32.gmra.mxu1 %vm85_vm0, %v53_v63  ;;  %v2824_v63 = vld [vmem:[#allocation3 + $0x18] sm:$0xff] }
  0x39   :  { %461 = vmatprep.subr.mxu0 %v2779_v1  ;;  %532 = vmatprep.subr.mxu1 %v2781_v2  ;;  %3844 = vst [vmem:[#allocation28_spill] sm:$0xff] %v2824_v63 }
  0x3a   :  { %462 = vmatpush1.msra.mxu0 %v2785_v3  ;;  %533 = vmatpush1.msra.mxu1 %v2787_v4 }
  0x3b   :  { %463 = vmatprep.subr.mxu0 %v2791_v5  ;;  %534 = vmatprep.subr.mxu1 %v2793_v6 }
  0x3c   :  { %216 = vmatprep.mubr.f32.mxu0 %v3728_v0  ;;  %329 = vmatprep.mubr.f32.mxu1 %v3728_v0  ;;  %v2828_v0 = vld [vmem:[#allocation3] sm:$0xff] }
  0x3d   :  { %464 = vmatpush1.msra.mxu0 %v2799_v7  ;;  %535 = vmatpush1.msra.mxu1 %v2801_v8  ;;  %3845 = vst [vmem:[#allocation29_spill] sm:$0xff] %v2828_v0  ;;  %v2832_v8 = vld [vmem:[#allocation3 + $0x10] sm:$0xff] }
  0x3e   :  { %2138 = vmatmul.mubr.msk.f32.gmra.mxu0 %vm85_vm0, %v54_v9  ;;  %2146 = vmatmul.mubr.msk.f32.gmra.mxu1 %vm85_vm0, %v54_v9  ;;  %3846 = vst [vmem:[#allocation30_spill] sm:$0xff] %v2832_v8  ;;  %v3847_v9 = vmov 0.0  }
  0x3f   :  { %465 = vmatprep.subr.mxu0 %v2810_v18  ;;  %536 = vmatprep.subr.mxu1 %v2812_v27 }
  0x40   :  { %466 = vmatpush1.msra.mxu0 %v2816_v36  ;;  %537 = vmatpush1.msra.mxu1 %v2818_v45 }
  0x41   :  { %467 = vmatprep.subr.mxu0 %v2822_v54  ;;  %538 = vmatprep.subr.mxu1 %v2824_v63 }
  0x42   :  { %468 = vmatpush1.msra.mxu0 %v2828_v0  ;;  %501 = vmatprep.mubr.f32.mxu0 %v3847_v9 }
  0x43   :  { %539 = vmatpush1.msra.mxu1 %v2832_v8  ;;  %572 = vmatprep.mubr.f32.mxu1 %v3847_v9 }
  0x44   :  { %502 = vmatmul.mubr.f32.vlgmr.msra.gmra.mxu0 %v3847_v9  ;;  %573 = vmatmul.mubr.f32.vlgmr.msra.gmra.mxu1 %v3847_v9 }
  0x45   :  { %620 = vmatprep.subr.mxu0 %v2595_v10  ;;  %691 = vmatprep.subr.mxu1 %v2597_v11 }
  0x46   :  { %621 = vmatpush1.msra.mxu0 %v2599_v12  ;;  %692 = vmatpush1.msra.mxu1 %v2601_v13 }
  0x47   :  { %622 = vmatprep.subr.mxu0 %v2605_v14  ;;  %693 = vmatprep.subr.mxu1 %v2607_v15 }
  0x48   :  { %623 = vmatpush1.msra.mxu0 %v2613_v16  ;;  %694 = vmatpush1.msra.mxu1 %v2615_v17 }
  0x49   :  { %624 = vmatprep.subr.mxu0 %v2624_v19  ;;  %695 = vmatprep.subr.mxu1 %v2626_v20 }
  0x4a   :  { %625 = vmatpush1.msra.mxu0 %v2630_v21  ;;  %696 = vmatpush1.msra.mxu1 %v2632_v22 }
  0x4b   :  { %626 = vmatprep.subr.mxu0 %v2636_v23  ;;  %697 = vmatprep.subr.mxu1 %v2638_v24 }
  0x4c   :  { %627 = vmatpush1.msra.mxu0 %v2644_v25  ;;  %698 = vmatpush1.msra.mxu1 %v2646_v26 }
  0x4d   :  { %628 = vmatprep.subr.mxu0 %v2655_v28  ;;  %699 = vmatprep.subr.mxu1 %v2657_v29 }
  0x4e   :  { %629 = vmatpush1.msra.mxu0 %v2661_v30  ;;  %700 = vmatpush1.msra.mxu1 %v2663_v31 }
  0x4f   :  { %630 = vmatprep.subr.mxu0 %v2667_v32  ;;  %701 = vmatprep.subr.mxu1 %v2669_v33 }
  0x50   :  { %631 = vmatpush1.msra.mxu0 %v2675_v34  ;;  %702 = vmatpush1.msra.mxu1 %v2677_v35 }
  0x51   :  { %632 = vmatprep.subr.mxu0 %v2686_v37  ;;  %703 = vmatprep.subr.mxu1 %v2688_v38 }
  0x52   :  { %633 = vmatpush1.msra.mxu0 %v2692_v39  ;;  %704 = vmatpush1.msra.mxu1 %v2694_v40 }
  0x53   :  { %634 = vmatprep.subr.mxu0 %v2698_v41  ;;  %705 = vmatprep.subr.mxu1 %v2700_v42 }
  0x54   :  { %635 = vmatpush1.msra.mxu0 %v2706_v43  ;;  %706 = vmatpush1.msra.mxu1 %v2708_v44 }
  0x55   :  { %636 = vmatprep.subr.mxu0 %v2717_v46  ;;  %707 = vmatprep.subr.mxu1 %v2719_v47 }
  0x56   :  { %637 = vmatpush1.msra.mxu0 %v2723_v48  ;;  %708 = vmatpush1.msra.mxu1 %v2725_v49 }
  0x57   :  { %638 = vmatprep.subr.mxu0 %v2729_v50  ;;  %709 = vmatprep.subr.mxu1 %v2731_v51 }
  0x58   :  { %639 = vmatpush1.msra.mxu0 %v2737_v52  ;;  %710 = vmatpush1.msra.mxu1 %v2739_v53 }
  0x59   :  { %640 = vmatprep.subr.mxu0 %v2748_v55  ;;  %711 = vmatprep.subr.mxu1 %v2750_v56 }
  0x5a   :  { %641 = vmatpush1.msra.mxu0 %v2754_v57  ;;  %712 = vmatpush1.msra.mxu1 %v2756_v58 }
  0x5b   :  { %642 = vmatprep.subr.mxu0 %v2760_v59  ;;  %713 = vmatprep.subr.mxu1 %v2762_v60  ;;  %v3848_v59 = vld [vmem:[#allocation22_spill] sm:$0xff] }
  0x5c   :  { %643 = vmatpush1.msra.mxu0 %v2768_v61  ;;  %714 = vmatpush1.msra.mxu1 %v2770_v62 }
  0x5d   :  { %644 = vmatprep.subr.mxu0 %v2779_v1  ;;  %715 = vmatprep.subr.mxu1 %v2781_v2 }
  0x5e   :  { %645 = vmatpush1.msra.mxu0 %v2785_v3  ;;  %716 = vmatpush1.msra.mxu1 %v2787_v4 }
  0x5f   :  { %646 = vmatprep.subr.mxu0 %v2791_v5  ;;  %717 = vmatprep.subr.mxu1 %v2793_v6 }
  0x60   :  { %647 = vmatpush1.msra.mxu0 %v2799_v7  ;;  %718 = vmatpush1.msra.mxu1 %v3848_v59 }
  0x61   :  { %648 = vmatprep.subr.mxu0 %v2810_v18  ;;  %719 = vmatprep.subr.mxu1 %v2812_v27  ;;  %v65_v27 = vlaneseq }
  0x62   :  { %649 = vmatpush1.msra.mxu0 %v2816_v36  ;;  %720 = vmatpush1.msra.mxu1 %v2818_v45 }
  0x63   :  { %650 = vmatprep.subr.mxu0 %v2822_v54  ;;  %721 = vmatprep.subr.mxu1 %v2824_v63  ;;  %v66_v36 = vshrl.u32 %v65_v27, 7 }
  0x64   :  { %651 = vmatpush1.msra.mxu0 %v2828_v0  ;;  %684 = vmatprep.mubr.f32.mxu0 %v3847_v9  ;;  %v63_v0 = vld [vmem:[%s3722_s4] sm:$0xf] }
  0x65   :  { %722 = vmatpush1.msra.mxu1 %v2832_v8  ;;  %755 = vmatprep.mubr.f32.mxu1 %v3847_v9  ;;  %v67_v54 = vsub.s32 0, %v66_v36  ;;  %v75_v63 = vsub.s32 2, %v66_v36  ;;  %v71_v9 = vsub.s32 1, %v66_v36 }
  0x66   :  { %808 = vmatprep.subr.mxu0 %v2595_v10  ;;  %879 = vmatprep.subr.mxu1 %v2597_v11  ;;  %v79_v10 = vsub.s32 3, %v66_v36 }
  0x67   :  { %v68_v7 = vrot.slane %v63_v0, %v67_v54  ;;  %v2921_v11 = vrot.slane %v63_v0, %v75_v63  ;;  %v72_v5 = vrot.slane %v63_v0, %v71_v9 }
  0x68   :  { %v2923_v4 = vrot.slane %v63_v0, %v79_v10 }
  0xd4   :  { %v2910_v18 = vpop.f32.mrf.mxu0  ;;  %v2912_v45 = vpop.f32.mrf.mxu1 }
  0xd6   :  { %v2917_v59 = vpop.f32.mrf.mxu0  ;;  %v2919_v8 = vpop.f32.mrf.mxu1 }
  0xda   :  { %v182_v27 = vpop.f32.mrf.mxu0  ;;  %v295_v6 = vpop.f32.mrf.mxu1 }
  0xdb   :  { %v2925_v3 = vadd.f32 %v182_v27, %v68_v7  ;;  %v2928_v2 = vadd.f32 %v295_v6, %v2921_v11 }
  0xdc   :  { %v184_v1 = vpop.f32.mrf.mxu0  ;;  %v297_v62 = vpop.f32.mrf.mxu1 }
  0xdd   :  { %3849 = vst [vmem:[#allocation31_spill] sm:$0xff] %v2925_v3  ;;  %3850 = vst [vmem:[#allocation32_spill] sm:$0xff] %v2928_v2  ;;  %v2930_v61 = vadd.f32 %v184_v1, %v72_v5  ;;  %v2933_v60 = vadd.f32 %v297_v62, %v2923_v4 }
  0xdf   :  { %3851 = vst [vmem:[#allocation33_spill] sm:$0xff] %v2930_v61  ;;  %3852 = vst [vmem:[#allocation34_spill] sm:$0xff] %v2933_v60 }
  0xe0   :  { %v188_v36 = vpop.f32.mrf.mxu0  ;;  %v301_v54 = vpop.f32.mrf.mxu1 }
  0xe1   :  { %v2935_v63 = vadd.f32 %v188_v36, %v68_v7  ;;  %v2938_v9 = vadd.f32 %v301_v54, %v2921_v11 }
  0xe2   :  { %v190_v0 = vpop.f32.mrf.mxu0  ;;  %v303_v10 = vpop.f32.mrf.mxu1 }
  0xe3   :  { %3853 = vst [vmem:[#allocation35_spill] sm:$0xff] %v2935_v63  ;;  %3854 = vst [vmem:[#allocation36_spill] sm:$0xff] %v2938_v9  ;;  %v2940_v27 = vadd.f32 %v190_v0, %v72_v5  ;;  %v2943_v6 = vadd.f32 %v303_v10, %v2923_v4 }
  0xe5   :  { %3855 = vst [vmem:[#allocation37_spill] sm:$0xff] %v2940_v27  ;;  %3856 = vst [vmem:[#allocation38_spill] sm:$0xff] %v2943_v6 }
  0xe6   :  { %v194_v2 = vpop.f32.mrf.mxu0  ;;  %v307_v1 = vpop.f32.mrf.mxu1 }
  0xe7   :  { %v2945_v61 = vadd.f32 %v194_v2, %v68_v7  ;;  %v2948_v62 = vadd.f32 %v307_v1, %v2921_v11 }
  0xe8   :  { %v196_v60 = vpop.f32.mrf.mxu0  ;;  %v309_v36 = vpop.f32.mrf.mxu1 }
  0xe9   :  { %3857 = vst [vmem:[#allocation39_spill] sm:$0xff] %v2945_v61  ;;  %3858 = vst [vmem:[#allocation40_spill] sm:$0xff] %v2948_v62  ;;  %v2950_v63 = vadd.f32 %v196_v60, %v72_v5  ;;  %v2953_v54 = vadd.f32 %v309_v36, %v2923_v4 }
  0xeb   :  { %3859 = vst [vmem:[#allocation41_spill] sm:$0xff] %v2950_v63  ;;  %3860 = vst [vmem:[#allocation42_spill] sm:$0xff] %v2953_v54 }
  0xec   :  { %v200_v9 = vpop.f32.mrf.mxu0  ;;  %v313_v0 = vpop.f32.mrf.mxu1 }
  0xed   :  { %v2955_v27 = vadd.f32 %v200_v9, %v68_v7  ;;  %v2958_v10 = vadd.f32 %v313_v0, %v2921_v11 }
  0xee   :  { %v202_v6 = vpop.f32.mrf.mxu0  ;;  %v315_v2 = vpop.f32.mrf.mxu1 }
  0xef   :  { %3861 = vst [vmem:[#allocation43_spill] sm:$0xff] %v2955_v27  ;;  %3862 = vst [vmem:[#allocation44_spill] sm:$0xff] %v2958_v10  ;;  %v2960_v61 = vadd.f32 %v202_v6, %v72_v5  ;;  %v2963_v1 = vadd.f32 %v315_v2, %v2923_v4 }
  0xf1   :  { %3863 = vst [vmem:[#allocation45_spill] sm:$0xff] %v2960_v61  ;;  %3864 = vst [vmem:[#allocation46_spill] sm:$0xff] %v2963_v1 }
  0xf2   :  { %v206_v62 = vpop.f32.mrf.mxu0  ;;  %v319_v60 = vpop.f32.mrf.mxu1 }
  0xf3   :  { %v2965_v63 = vadd.f32 %v206_v62, %v68_v7  ;;  %v2968_v36 = vadd.f32 %v319_v60, %v2921_v11 }
  0xf4   :  { %v208_v54 = vpop.f32.mrf.mxu0  ;;  %v321_v9 = vpop.f32.mrf.mxu1 }
  0xf5   :  { %3865 = vst [vmem:[#allocation47_spill] sm:$0xff] %v2965_v63  ;;  %3866 = vst [vmem:[#allocation48_spill] sm:$0xff] %v2968_v36  ;;  %v2970_v27 = vadd.f32 %v208_v54, %v72_v5  ;;  %v2973_v0 = vadd.f32 %v321_v9, %v2923_v4 }
  0xf7   :  { %3867 = vst [vmem:[#allocation49_spill] sm:$0xff] %v2970_v27  ;;  %3868 = vst [vmem:[#allocation50_spill] sm:$0xff] %v2973_v0 }
  0xf8   :  { %v212_v10 = vpop.f32.mrf.mxu0  ;;  %v325_v6 = vpop.f32.mrf.mxu1 }
  0xf9   :  { %v2975_v61 = vadd.f32 %v212_v10, %v68_v7  ;;  %v2978_v2 = vadd.f32 %v325_v6, %v2921_v11 }
  0xfa   :  { %v214_v1 = vpop.f32.mrf.mxu0  ;;  %v327_v62 = vpop.f32.mrf.mxu1 }
  0xfb   :  { %3869 = vst [vmem:[#allocation51_spill] sm:$0xff] %v2975_v61  ;;  %3870 = vst [vmem:[#allocation52_spill] sm:$0xff] %v2978_v2  ;;  %v2980_v63 = vadd.f32 %v214_v1, %v72_v5  ;;  %v2983_v60 = vadd.f32 %v327_v62, %v2923_v4  ;;  %v177_v1 = vadd.f32 %v2910_v18, %v68_v7 }
  0xfc   :  { %v179_v62 = vadd.f32 %v2917_v59, %v72_v5 }
  0xfd   :  { %3871 = vst [vmem:[#allocation53_spill] sm:$0xff] %v2980_v63  ;;  %3872 = vst [vmem:[#allocation54_spill] sm:$0xff] %v2983_v60 }
  0xfe   :  { %v218_v36 = vpop.f32.mrf.mxu0  ;;  %v331_v54 = vpop.f32.mrf.mxu1 }
  0xff   :  { %v2985_v27 = vadd.f32 %v218_v36, %v68_v7  ;;  %v2988_v9 = vadd.f32 %v331_v54, %v2921_v11 }
 0x100   :  { %v220_v0 = vpop.f32.mrf.mxu0  ;;  %v333_v10 = vpop.f32.mrf.mxu1 }
 0x101   :  { %3873 = vst [vmem:[#allocation55_spill] sm:$0xff] %v2985_v27  ;;  %3874 = vst [vmem:[#allocation56_spill] sm:$0xff] %v2988_v9  ;;  %v2990_v61 = vadd.f32 %v220_v0, %v72_v5  ;;  %v2993_v6 = vadd.f32 %v333_v10, %v2923_v4  ;;  %v290_v0 = vadd.f32 %v2912_v45, %v2921_v11 }
 0x102   :  { %v292_v10 = vadd.f32 %v2919_v8, %v2923_v4  ;;  %v3007_v8 = vld [vmem:[%s3723_s5] ss:$0 sm:$0xff] }
 0x103   :  { %3875 = vst [vmem:[#allocation57_spill] sm:$0xff] %v2990_v61  ;;  %3876 = vst [vmem:[#allocation58_spill] sm:$0xff] %v2993_v6 }
 0x104   :  { %v503_v2 = vpop.f32.mrf.mxu0  ;;  %v574_v54 = vpop.f32.mrf.mxu1 }
 0x105   :  { %v579_v60 = vadd.f32 %v503_v2, %v177_v1  ;;  %v581_v9 = vadd.f32 %v574_v54, %v290_v0  ;;  %v3879_v54 = vld [vmem:[#allocation12_spill] sm:$0xff]  ;;  %v3880_v0 = vld [vmem:[#allocation13_spill] sm:$0xff] }
 0x106   :  { %v505_v63 = vpop.f32.mrf.mxu0  ;;  %v576_v61 = vpop.f32.mrf.mxu1 }
 0x107   :  { %v2147_v3 = vmul.f32 -1.442695, %v579_v60  ;;  %v580_v36 = vadd.f32 %v505_v63, %v179_v62  ;;  %v2149_v7 = vmul.f32 -1.442695, %v581_v9  ;;  %v582_v6 = vadd.f32 %v576_v61, %v292_v10  ;;  %v3881_v10 = vld [vmem:[#allocation14_spill] sm:$0xff] }
 0x109   :  { %2240 = vpow2.f32 %v2147_v3  ;;  %v2148_v27 = vmul.f32 -1.442695, %v580_v36  ;;  %v3878_v36 = vld [vmem:[#allocation11_spill] sm:$0xff] }
 0x10b   :  { %2242 = vpow2.f32 %v2148_v27 }
 0x10c   :  { %2244 = vpow2.f32 %v2149_v7  ;;  %v3882_v7 = vld [vmem:[#allocation15_spill] sm:$0xff] }
 0x116   :  { %v2241_v18 = vpop.eup %2240 }
 0x117   :  { %v592_v59 = vadd.f32 1.0, %v2241_v18  ;;  %v3883_v18 = vld [vmem:[#allocation16_spill] sm:$0xff] }
 0x118   :  { %v2243_v5 = vpop.eup %2242 }
 0x119   :  { %2246 = vrcp.f32 %v592_v59  ;;  %v593_v63 = vadd.f32 1.0, %v2243_v5  ;;  %v2245_v3 = vpop.eup %2244  ;;  %v3884_v59 = vld [vmem:[#allocation17_spill] sm:$0xff]  ;;  %v3885_v5 = vld [vmem:[#allocation18_spill] sm:$0xff] }
 0x11a   :  { %2248 = vtanh.f32 %v582_v6  ;;  %v594_v11 = vadd.f32 1.0, %v2245_v3  ;;  %v3887_v3 = vld [vmem:[#allocation20_spill] sm:$0xff] }
 0x11b   :  { %2250 = vrcp.f32 %v593_v63  ;;  %v3886_v63 = vld [vmem:[#allocation19_spill] sm:$0xff] }
 0x11c   :  { %2252 = vrcp.f32 %v594_v11  ;;  %v3891_v11 = vld [vmem:[#allocation24_spill] sm:$0xff] }
 0x126   :  { %v2247_v27 = vpop.eup %2246 }
 0x127   :  { %v2249_v2 = vpop.eup %2248 }
 0x128   :  { %v2251_v60 = vpop.eup %2250  ;;  %v603_v1 = vmul.f32 %v2249_v2, %v2247_v27  ;;  %v3888_v27 = vld [vmem:[#allocation21_spill] sm:$0xff]  ;;  %v3889_v2 = vld [vmem:[#allocation22_spill] sm:$0xff] }
 0x129   :  { %v602_v45 = vmul.f32 0.0, %v2251_v60  ;;  %v2253_v61 = vpop.eup %2252  ;;  %v3890_v60 = vld [vmem:[#allocation23_spill] sm:$0xff] }
 0x12b   :  { %v3001_v62 = vadd.f32 %v603_v1, %v602_v45  ;;  %v3892_v45 = vld [vmem:[#allocation25_spill] sm:$0xff]  ;;  %v3893_v1 = vld [vmem:[#allocation26_spill] sm:$0xff] }
 0x12d   :  { %2254 = vtanh.f32 %v3001_v62 }
 0x13a   :  { %v2255_v4 = vpop.eup %2254 }
 0x13b   :  { %v3009_v9 = vmul.f32 %v2255_v4, %v2253_v61  ;;  %v3894_v61 = vld [vmem:[#allocation27_spill] sm:$0xff]  ;;  %v3895_v4 = vld [vmem:[#allocation28_spill] sm:$0xff] }
 0x13d   :  { %3877 = vst [vmem:[#allocation59_spill] sm:$0xff] %v3009_v9  ;;  %685 = vmatmul.mubr.f32.vlgmr.msra.gmra.mxu0 %v3009_v9  ;;  %756 = vmatmul.mubr.f32.vlgmr.msra.gmra.mxu1 %v3009_v9  ;;  %v613_v6 = vmul.f32 %v3007_v8, %v3009_v9  ;;  %v3897_v9 = vmov 0.0  }
 0x13e   :  { %809 = vmatpush1.msra.mxu0 %v2599_v12  ;;  %880 = vmatpush1.msra.mxu1 %v2601_v13 }
 0x13f   :  { %614 = vadd.xlane.f32.xlu0 %v613_v6  ;;  %810 = vmatprep.subr.mxu0 %v2605_v14  ;;  %v3896_v6 = vld [vmem:[#allocation29_spill] sm:$0xff] }
 0x140   :  { %881 = vmatprep.subr.mxu1 %v2607_v15  ;;  %811 = vmatpush1.msra.mxu0 %v2613_v16 }
 0x141   :  { %882 = vmatpush1.msra.mxu1 %v2615_v17  ;;  %812 = vmatprep.subr.mxu0 %v2624_v19 }
 0x142   :  { %883 = vmatprep.subr.mxu1 %v2626_v20  ;;  %813 = vmatpush1.msra.mxu0 %v2630_v21 }
 0x143   :  { %884 = vmatpush1.msra.mxu1 %v2632_v22  ;;  %814 = vmatprep.subr.mxu0 %v2636_v23 }
 0x144   :  { %885 = vmatprep.subr.mxu1 %v2638_v24  ;;  %815 = vmatpush1.msra.mxu0 %v2644_v25 }
 0x145   :  { %886 = vmatpush1.msra.mxu1 %v2646_v26  ;;  %816 = vmatprep.subr.mxu0 %v2655_v28 }
 0x146   :  { %887 = vmatprep.subr.mxu1 %v2657_v29  ;;  %817 = vmatpush1.msra.mxu0 %v2661_v30 }
 0x147   :  { %888 = vmatpush1.msra.mxu1 %v2663_v31  ;;  %818 = vmatprep.subr.mxu0 %v2667_v32 }
 0x148   :  { %889 = vmatprep.subr.mxu1 %v2669_v33  ;;  %819 = vmatpush1.msra.mxu0 %v2675_v34 }
 0x149   :  { %890 = vmatpush1.msra.mxu1 %v2677_v35  ;;  %820 = vmatprep.subr.mxu0 %v2686_v37 }
 0x14a   :  { %891 = vmatprep.subr.mxu1 %v2688_v38  ;;  %821 = vmatpush1.msra.mxu0 %v2692_v39 }
 0x14b   :  { %892 = vmatpush1.msra.mxu1 %v2694_v40  ;;  %822 = vmatprep.subr.mxu0 %v2698_v41 }
 0x14c   :  { %893 = vmatprep.subr.mxu1 %v2700_v42  ;;  %823 = vmatpush1.msra.mxu0 %v2706_v43 }
 0x14d   :  { %894 = vmatpush1.msra.mxu1 %v2708_v44  ;;  %824 = vmatprep.subr.mxu0 %v2717_v46 }
 0x14e   :  { %895 = vmatprep.subr.mxu1 %v2719_v47  ;;  %825 = vmatpush1.msra.mxu0 %v2723_v48 }
 0x14f   :  { %896 = vmatpush1.msra.mxu1 %v2725_v49  ;;  %826 = vmatprep.subr.mxu0 %v2729_v50 }
 0x150   :  { %897 = vmatprep.subr.mxu1 %v2731_v51  ;;  %827 = vmatpush1.msra.mxu0 %v2737_v52 }
 0x151   :  { %898 = vmatpush1.msra.mxu1 %v2739_v53  ;;  %828 = vmatprep.subr.mxu0 %v2748_v55 }
 0x152   :  { %899 = vmatprep.subr.mxu1 %v2750_v56  ;;  %829 = vmatpush1.msra.mxu0 %v2754_v57 }
 0x153   :  { %900 = vmatpush1.msra.mxu1 %v2756_v58  ;;  %830 = vmatprep.subr.mxu0 %v3878_v36 }
 0x154   :  { %901 = vmatprep.subr.mxu1 %v3879_v54  ;;  %831 = vmatpush1.msra.mxu0 %v3880_v0 }
 0x155   :  { %902 = vmatpush1.msra.mxu1 %v3881_v10  ;;  %832 = vmatprep.subr.mxu0 %v3882_v7 }
 0x156   :  { %903 = vmatprep.subr.mxu1 %v3883_v18  ;;  %833 = vmatpush1.msra.mxu0 %v3884_v59  ;;  %v3903_v59 = vld [vmem:[#allocation32_spill] sm:$0xff] }
 0x157   :  { %904 = vmatpush1.msra.mxu1 %v3885_v5  ;;  %834 = vmatprep.subr.mxu0 %v3886_v63 }
 0x158   :  { %905 = vmatprep.subr.mxu1 %v3887_v3  ;;  %835 = vmatpush1.msra.mxu0 %v3888_v27  ;;  %v3898_v3 = vld [vmem:[#allocation30_spill] sm:$0xff] }
 0x159   :  { %906 = vmatpush1.msra.mxu1 %v3889_v2  ;;  %836 = vmatprep.subr.mxu0 %v3890_v60  ;;  %v3899_v2 = vld [vmem:[#allocation9_spill] sm:$0xff]  ;;  %v3900_v60 = vld [vmem:[#allocation10_spill] sm:$0xff] }
 0x15a   :  { %907 = vmatprep.subr.mxu1 %v3891_v11  ;;  %837 = vmatpush1.msra.mxu0 %v3892_v45  ;;  %v3901_v45 = vld [vmem:[#allocation31_spill] sm:$0xff] }
 0x15b   :  { %908 = vmatpush1.msra.mxu1 %v3893_v1  ;;  %838 = vmatprep.subr.mxu0 %v3894_v61  ;;  %v3902_v61 = vld [vmem:[#allocation33_spill] sm:$0xff] }
 0x15c   :  { %909 = vmatprep.subr.mxu1 %v3895_v4  ;;  %839 = vmatpush1.msra.mxu0 %v3896_v6 }
 0x15d   :  { %872 = vmatprep.mubr.f32.mxu0 %v3897_v9  ;;  %910 = vmatpush1.msra.mxu1 %v3898_v3 }
 0x15e   :  { %943 = vmatprep.mubr.f32.mxu1 %v3897_v9  ;;  %997 = vmatprep.subr.mxu0 %v3899_v2  ;;  %v3904_v9 = vld [vmem:[#allocation34_spill] sm:$0xff] }
 0x15f   :  { %1068 = vmatprep.subr.mxu1 %v3900_v60 }
 0x1fd   :  { %v686_v11 = vpop.f32.mrf.mxu0  ;;  %v757_v6 = vpop.f32.mrf.mxu1 }
 0x1fe   :  { %v762_v27 = vadd.f32 %v686_v11, %v3901_v45  ;;  %v764_v18 = vadd.f32 %v757_v6, %v3903_v59 }
 0x1ff   :  { %v688_v1 = vpop.f32.mrf.mxu0  ;;  %v759_v3 = vpop.f32.mrf.mxu1 }
 0x200   :  { %v2151_v63 = vmul.f32 -1.442695, %v762_v27  ;;  %v763_v5 = vadd.f32 %v688_v1, %v3902_v61  ;;  %v2153_v7 = vmul.f32 -1.442695, %v764_v18  ;;  %v765_v10 = vadd.f32 %v759_v3, %v3904_v9 }
 0x202   :  { %2256 = vpow2.f32 %v2151_v63  ;;  %v2152_v4 = vmul.f32 -1.442695, %v763_v5 }
 0x204   :  { %2258 = vpow2.f32 %v2152_v4 }
 0x205   :  { %2260 = vpow2.f32 %v2153_v7 }
 0x206   :  { %2262 = vtanh.f32 %v765_v10 }
 0x20f   :  { %v2257_v2 = vpop.eup %2256 }
 0x210   :  { %v775_v0 = vadd.f32 1.0, %v2257_v2  ;;  %v3930_v2 = vld [vmem:[#allocation38_spill] sm:$0xff] }
 0x211   :  { %v2259_v60 = vpop.eup %2258 }
 0x212   :  { %2264 = vrcp.f32 %v775_v0  ;;  %v776_v11 = vadd.f32 1.0, %v2259_v60  ;;  %v2261_v27 = vpop.eup %2260 }
 0x213   :  { %v2263_v45 = vpop.eup %2262  ;;  %v777_v61 = vadd.f32 1.0, %v2261_v27 }
 0x214   :  { %2266 = vrcp.f32 %v776_v11 }
 0x215   :  { %2268 = vrcp.f32 %v777_v61 }
 0x21f   :  { %v2265_v63 = vpop.eup %2264 }
 0x220   :  { %v786_v5 = vmul.f32 %v2265_v63, %v2263_v45 }
 0x221   :  { %v2267_v1 = vpop.eup %2266 }
 0x222   :  { %v785_v59 = vmul.f32 %v2267_v1, %v3001_v62  ;;  %v2269_v9 = vpop.eup %2268  ;;  %v3929_v62 = vld [vmem:[#allocation36_spill] sm:$0xff] }
 0x224   :  { %v3086_v4 = vadd.f32 %v786_v5, %v785_v59 }
 0x226   :  { %2270 = vtanh.f32 %v3086_v4 }
 0x233   :  { %v2271_v7 = vpop.eup %2270 }
 0x234   :  { %v3089_v18 = vmul.f32 %v2271_v7, %v2269_v9 }
 0x236   :  { %3905 = vst [vmem:[#allocation11_spill] sm:$0xff] %v3089_v18  ;;  %873 = vmatmul.mubr.f32.vlgmr.msra.gmra.mxu0 %v3089_v18  ;;  %944 = vmatmul.mubr.f32.vlgmr.msra.gmra.mxu1 %v3089_v18  ;;  %v790_v0 = vmul.f32 %v3007_v8, %v3089_v18  ;;  %v3257_v18 = vld [vmem:[#allocation3 + $0x108] sm:$0xff] }
 0x237   :  { %998 = vmatpush1.msra.mxu0 %v2599_v12  ;;  %1069 = vmatpush1.msra.mxu1 %v2601_v13  ;;  %v3906_v12 = vld [vmem:[#allocation13_spill] sm:$0xff]  ;;  %v3907_v13 = vld [vmem:[#allocation14_spill] sm:$0xff] }
 0x238   :  { %791 = vadd.xlane.f32.xlu0 %v790_v0  ;;  %999 = vmatprep.subr.mxu0 %v2605_v14  ;;  %v3908_v14 = vld [vmem:[#allocation15_spill] sm:$0xff] }
 0x239   :  { %1070 = vmatprep.subr.mxu1 %v2607_v15  ;;  %1000 = vmatpush1.msra.mxu0 %v2613_v16  ;;  %v3909_v15 = vld [vmem:[#allocation16_spill] sm:$0xff]  ;;  %v3910_v16 = vld [vmem:[#allocation17_spill] sm:$0xff] }
 0x23a   :  { %1071 = vmatpush1.msra.mxu1 %v2615_v17  ;;  %1001 = vmatprep.subr.mxu0 %v2624_v19  ;;  %v3911_v17 = vld [vmem:[#allocation18_spill] sm:$0xff]  ;;  %v3912_v19 = vld [vmem:[#allocation19_spill] sm:$0xff] }
 0x23b   :  { %1072 = vmatprep.subr.mxu1 %v2626_v20  ;;  %1002 = vmatpush1.msra.mxu0 %v2630_v21  ;;  %v3913_v20 = vld [vmem:[#allocation20_spill] sm:$0xff]  ;;  %v3914_v21 = vld [vmem:[#allocation21_spill] sm:$0xff] }
 0x23c   :  { %1073 = vmatpush1.msra.mxu1 %v2632_v22  ;;  %1003 = vmatprep.subr.mxu0 %v2636_v23  ;;  %v3915_v22 = vld [vmem:[#allocation22_spill] sm:$0xff]  ;;  %v3916_v23 = vld [vmem:[#allocation23_spill] sm:$0xff] }
 0x23d   :  { %1074 = vmatprep.subr.mxu1 %v2638_v24  ;;  %1004 = vmatpush1.msra.mxu0 %v2644_v25  ;;  %v3917_v24 = vld [vmem:[#allocation24_spill] sm:$0xff]  ;;  %v3918_v25 = vld [vmem:[#allocation25_spill] sm:$0xff] }
 0x23e   :  { %1075 = vmatpush1.msra.mxu1 %v2646_v26  ;;  %1005 = vmatprep.subr.mxu0 %v2655_v28  ;;  %v3919_v26 = vld [vmem:[#allocation26_spill] sm:$0xff]  ;;  %v3920_v28 = vld [vmem:[#allocation27_spill] sm:$0xff] }
 0x23f   :  { %1076 = vmatprep.subr.mxu1 %v2657_v29  ;;  %1006 = vmatpush1.msra.mxu0 %v2661_v30  ;;  %v3921_v29 = vld [vmem:[#allocation28_spill] sm:$0xff]  ;;  %v3922_v30 = vld [vmem:[#allocation29_spill] sm:$0xff] }
 0x240   :  { %1077 = vmatpush1.msra.mxu1 %v2663_v31  ;;  %1007 = vmatprep.subr.mxu0 %v2667_v32  ;;  %v3923_v31 = vmov 0.0   ;;  %v3924_v32 = vld [vmem:[#allocation30_spill] sm:$0xff] }
 0x241   :  { %1078 = vmatprep.subr.mxu1 %v2669_v33  ;;  %1008 = vmatpush1.msra.mxu0 %v2675_v34  ;;  %v3159_v33 = vld [vmem:[#allocation3 + $0x1e8] sm:$0xff]  ;;  %v3162_v34 = vld [vmem:[#allocation3 + $0x1f8] sm:$0xff] }
 0x242   :  { %1079 = vmatpush1.msra.mxu1 %v2677_v35  ;;  %1009 = vmatprep.subr.mxu0 %v2686_v37  ;;  %3925 = vst [vmem:[#allocation12_spill] sm:$0xff] %v3159_v33  ;;  %3926 = vst [vmem:[#allocation9_spill] sm:$0xff] %v3162_v34  ;;  %v3927_v37 = vld [vmem:[#allocation35_spill] sm:$0xff] }
 0x243   :  { %1080 = vmatprep.subr.mxu1 %v2688_v38  ;;  %1010 = vmatpush1.msra.mxu0 %v2692_v39 }
 0x244   :  { %1081 = vmatpush1.msra.mxu1 %v2694_v40  ;;  %1011 = vmatprep.subr.mxu0 %v2698_v41  ;;  %v3928_v41 = vld [vmem:[#allocation37_spill] sm:$0xff] }
 0x245   :  { %1082 = vmatprep.subr.mxu1 %v2700_v42  ;;  %1012 = vmatpush1.msra.mxu0 %v2706_v43 }
 0x246   :  { %1083 = vmatpush1.msra.mxu1 %v2708_v44  ;;  %1013 = vmatprep.subr.mxu0 %v2717_v46 }
 0x247   :  { %1084 = vmatprep.subr.mxu1 %v2719_v47  ;;  %1014 = vmatpush1.msra.mxu0 %v2723_v48 }
 0x248   :  { %1085 = vmatpush1.msra.mxu1 %v2725_v49  ;;  %1015 = vmatprep.subr.mxu0 %v2729_v50 }
 0x249   :  { %1086 = vmatprep.subr.mxu1 %v2731_v51  ;;  %1016 = vmatpush1.msra.mxu0 %v2737_v52 }
 0x24a   :  { %1087 = vmatpush1.msra.mxu1 %v2739_v53  ;;  %1017 = vmatprep.subr.mxu0 %v2748_v55 }
 0x24b   :  { %1088 = vmatprep.subr.mxu1 %v2750_v56  ;;  %1018 = vmatpush1.msra.mxu0 %v2754_v57 }
 0x24c   :  { %1089 = vmatpush1.msra.mxu1 %v2756_v58  ;;  %1019 = vmatprep.subr.mxu0 %v3878_v36 }
 0x24d   :  { %1090 = vmatprep.subr.mxu1 %v3879_v54  ;;  %1020 = vmatpush1.msra.mxu0 %v3906_v12 }
 0x24e   :  { %1091 = vmatpush1.msra.mxu1 %v3907_v13  ;;  %1021 = vmatprep.subr.mxu0 %v3908_v14 }
 0x24f   :  { %1092 = vmatprep.subr.mxu1 %v3909_v15  ;;  %1022 = vmatpush1.msra.mxu0 %v3910_v16 }
 0x250   :  { %1093 = vmatpush1.msra.mxu1 %v3911_v17  ;;  %1023 = vmatprep.subr.mxu0 %v3912_v19 }
 0x251   :  { %1094 = vmatprep.subr.mxu1 %v3913_v20  ;;  %1024 = vmatpush1.msra.mxu0 %v3914_v21 }
 0x252   :  { %1095 = vmatpush1.msra.mxu1 %v3915_v22  ;;  %1025 = vmatprep.subr.mxu0 %v3916_v23 }
 0x253   :  { %1096 = vmatprep.subr.mxu1 %v3917_v24  ;;  %1026 = vmatpush1.msra.mxu0 %v3918_v25 }
 0x254   :  { %1097 = vmatpush1.msra.mxu1 %v3919_v26  ;;  %1027 = vmatprep.subr.mxu0 %v3920_v28 }
 0x255   :  { %1098 = vmatprep.subr.mxu1 %v3921_v29  ;;  %1028 = vmatpush1.msra.mxu0 %v3922_v30 }
 0x256   :  { %1061 = vmatprep.mubr.f32.mxu0 %v3923_v31  ;;  %1099 = vmatpush1.msra.mxu1 %v3924_v32 }
 0x257   :  { %1132 = vmatprep.mubr.f32.mxu1 %v3923_v31  ;;  %1186 = vmatprep.subr.mxu0 %v3159_v33 }
 0x258   :  { %1257 = vmatprep.subr.mxu1 %v3162_v34 }
 0x2f6   :  { %v874_v35 = vpop.f32.mrf.mxu0  ;;  %v945_v44 = vpop.f32.mrf.mxu1 }
 0x2f7   :  { %v950_v38 = vadd.f32 %v874_v35, %v3927_v37  ;;  %v952_v10 = vadd.f32 %v945_v44, %v3929_v62  ;;  %v3191_v44 = vld [vmem:[#allocation3 + $0x1c0] sm:$0xff]  ;;  %v3194_v62 = vld [vmem:[#allocation3 + $0x1d0] sm:$0xff] }
 0x2f8   :  { %v876_v39 = vpop.f32.mrf.mxu0  ;;  %v947_v3 = vpop.f32.mrf.mxu1 }
 0x2f9   :  { %v2154_v40 = vmul.f32 -1.442695, %v950_v38  ;;  %v951_v42 = vadd.f32 %v876_v39, %v3928_v41  ;;  %v2156_v6 = vmul.f32 -1.442695, %v952_v10  ;;  %v953_v60 = vadd.f32 %v947_v3, %v3930_v2  ;;  %v3179_v41 = vld [vmem:[#allocation3 + $0x1e0] sm:$0xff]  ;;  %v3197_v10 = vld [vmem:[#allocation3 + $0x1a8] sm:$0xff] }
 0x2fa   :  { %v3200_v3 = vld [vmem:[#allocation3 + $0x1b8] sm:$0xff]  ;;  %v3206_v2 = vld [vmem:[#allocation3 + $0x1b0] sm:$0xff] }
 0x2fb   :  { %2272 = vpow2.f32 %v2154_v40  ;;  %v2155_v43 = vmul.f32 -1.442695, %v951_v42  ;;  %v3185_v42 = vld [vmem:[#allocation3 + $0x1c8] sm:$0xff] }
 0x2fd   :  { %2274 = vpow2.f32 %v2155_v43  ;;  %v3188_v43 = vld [vmem:[#allocation3 + $0x1d8] sm:$0xff] }
 0x2fe   :  { %2276 = vpow2.f32 %v2156_v6  ;;  %v3203_v6 = vld [vmem:[#allocation3 + $0x1a0] sm:$0xff] }
 0x2ff   :  { %2278 = vtanh.f32 %v953_v60  ;;  %v3209_v60 = vld [vmem:[#allocation3 + $0x188] sm:$0xff] }
 0x308   :  { %v2273_v11 = vpop.eup %2272 }
 0x309   :  { %v963_v27 = vadd.f32 1.0, %v2273_v11  ;;  %v3212_v11 = vld [vmem:[#allocation3 + $0x198] sm:$0xff] }
 0x30a   :  { %v2275_v45 = vpop.eup %2274 }
 0x30b   :  { %2280 = vrcp.f32 %v963_v27  ;;  %v964_v63 = vadd.f32 1.0, %v2275_v45  ;;  %v2277_v5 = vpop.eup %2276  ;;  %v3215_v27 = vld [vmem:[#allocation3 + $0x180] sm:$0xff]  ;;  %v3218_v45 = vld [vmem:[#allocation3 + $0x190] sm:$0xff] }
 0x30c   :  { %v2279_v1 = vpop.eup %2278  ;;  %v965_v7 = vadd.f32 1.0, %v2277_v5  ;;  %v3224_v5 = vld [vmem:[#allocation3 + $0x178] sm:$0xff] }
 0x30d   :  { %2282 = vrcp.f32 %v964_v63  ;;  %v3221_v63 = vld [vmem:[#allocation3 + $0x168] sm:$0xff] }
 0x30e   :  { %2284 = vrcp.f32 %v965_v7  ;;  %v3239_v7 = vld [vmem:[#allocation3 + $0x140] sm:$0xff] }
 0x318   :  { %v2281_v61 = vpop.eup %2280 }
 0x319   :  { %v974_v59 = vmul.f32 %v2281_v61, %v2279_v1  ;;  %v3227_v1 = vld [vmem:[#allocation3 + $0x160] sm:$0xff]  ;;  %v3230_v61 = vld [vmem:[#allocation3 + $0x170] sm:$0xff] }
 0x31a   :  { %v2283_v9 = vpop.eup %2282 }
 0x31b   :  { %v973_v0 = vmul.f32 %v2283_v9, %v3086_v4  ;;  %v2285_v37 = vpop.eup %2284  ;;  %v3182_v4 = vld [vmem:[#allocation3 + $0x1f0] sm:$0xff]  ;;  %v3236_v9 = vld [vmem:[#allocation3 + $0x158] sm:$0xff] }
 0x31d   :  { %v3170_v35 = vadd.f32 %v974_v59, %v973_v0  ;;  %v3233_v59 = vld [vmem:[#allocation3 + $0x148] sm:$0xff]  ;;  %v3242_v0 = vld [vmem:[#allocation3 + $0x150] sm:$0xff] }
 0x31e   :  { %3932 = vst [vmem:[#allocation31_spill] sm:$0xff] %v3242_v0 }
 0x31f   :  { %2286 = vtanh.f32 %v3170_v35 }
 0x32c   :  { %v2287_v38 = vpop.eup %2286 }
 0x32d   :  { %v3173_v39 = vmul.f32 %v2287_v38, %v2285_v37  ;;  %v3245_v37 = vld [vmem:[#allocation3 + $0x128] sm:$0xff]  ;;  %v3248_v38 = vld [vmem:[#allocation3 + $0x138] sm:$0xff] }
 0x32e   :  { %3933 = vst [vmem:[#allocation33_spill] sm:$0xff] %v3245_v37  ;;  %3934 = vst [vmem:[#allocation32_spill] sm:$0xff] %v3248_v38 }
 0x32f   :  { %3931 = vst [vmem:[#allocation10_spill] sm:$0xff] %v3173_v39  ;;  %1062 = vmatmul.mubr.f32.vlgmr.msra.gmra.mxu0 %v3173_v39  ;;  %1133 = vmatmul.mubr.f32.vlgmr.msra.gmra.mxu1 %v3173_v39  ;;  %v978_v40 = vmul.f32 %v3007_v8, %v3173_v39  ;;  %v3254_v39 = vld [vmem:[#allocation3 + $0x130] sm:$0xff] }
 0x330   :  { %1187 = vmatpush1.msra.mxu0 %v3179_v41  ;;  %1258 = vmatpush1.msra.mxu1 %v3182_v4 }
 0x331   :  { %979 = vadd.xlane.f32.xlu1 %v978_v40  ;;  %1188 = vmatprep.subr.mxu0 %v3185_v42  ;;  %v3251_v40 = vld [vmem:[#allocation3 + $0x120] sm:$0xff] }
 0x332   :  { %1259 = vmatprep.subr.mxu1 %v3188_v43  ;;  %1189 = vmatpush1.msra.mxu0 %v3191_v44 }
 0x333   :  { %1260 = vmatpush1.msra.mxu1 %v3194_v62  ;;  %1190 = vmatprep.subr.mxu0 %v3197_v10 }
 0x334   :  { %1261 = vmatprep.subr.mxu1 %v3200_v3  ;;  %1191 = vmatpush1.msra.mxu0 %v3203_v6 }
 0x335   :  { %1262 = vmatpush1.msra.mxu1 %v3206_v2  ;;  %1192 = vmatprep.subr.mxu0 %v3209_v60 }
 0x336   :  { %1263 = vmatprep.subr.mxu1 %v3212_v11  ;;  %1193 = vmatpush1.msra.mxu0 %v3215_v27 }
 0x337   :  { %1264 = vmatpush1.msra.mxu1 %v3218_v45  ;;  %1194 = vmatprep.subr.mxu0 %v3221_v63 }
 0x338   :  { %1265 = vmatprep.subr.mxu1 %v3224_v5  ;;  %1195 = vmatpush1.msra.mxu0 %v3227_v1 }
 0x339   :  { %1266 = vmatpush1.msra.mxu1 %v3230_v61  ;;  %1196 = vmatprep.subr.mxu0 %v3233_v59 }
 0x33a   :  { %1267 = vmatprep.subr.mxu1 %v3236_v9  ;;  %1197 = vmatpush1.msra.mxu0 %v3239_v7 }
 0x33b   :  { %1268 = vmatpush1.msra.mxu1 %v3242_v0  ;;  %1198 = vmatprep.subr.mxu0 %v3245_v37  ;;  %v3260_v0 = vld [vmem:[#allocation3 + $0x118] sm:$0xff]  ;;  %v3263_v37 = vld [vmem:[#allocation3 + $0x100] sm:$0xff] }
 0x33c   :  { %1269 = vmatprep.subr.mxu1 %v3248_v38  ;;  %1199 = vmatpush1.msra.mxu0 %v3251_v40  ;;  %v3266_v38 = vld [vmem:[#allocation3 + $0x110] sm:$0xff] }
 0x33d   :  { %1270 = vmatpush1.msra.mxu1 %v3254_v39  ;;  %1200 = vmatprep.subr.mxu0 %v3257_v18 }
 0x33e   :  { %1271 = vmatprep.subr.mxu1 %v3260_v0  ;;  %1201 = vmatpush1.msra.mxu0 %v3263_v37 }
 0x33f   :  { %1272 = vmatpush1.msra.mxu1 %v3266_v38  ;;  %1202 = vmatprep.subr.mxu0 %v2717_v46 }
 0x340   :  { %1273 = vmatprep.subr.mxu1 %v2719_v47  ;;  %1203 = vmatpush1.msra.mxu0 %v2723_v48  ;;  %v3935_v47 = vld [vmem:[#allocation39_spill] sm:$0xff] }
 0x341   :  { %1274 = vmatpush1.msra.mxu1 %v2725_v49  ;;  %1204 = vmatprep.subr.mxu0 %v2729_v50 }
 0x342   :  { %1275 = vmatprep.subr.mxu1 %v2731_v51  ;;  %1205 = vmatpush1.msra.mxu0 %v2737_v52  ;;  %v3936_v51 = vld [vmem:[#allocation41_spill] sm:$0xff] }
 0x343   :  { %1276 = vmatpush1.msra.mxu1 %v2739_v53  ;;  %1206 = vmatprep.subr.mxu0 %v2748_v55 }
 0x344   :  { %1277 = vmatprep.subr.mxu1 %v2750_v56  ;;  %1207 = vmatpush1.msra.mxu0 %v2754_v57  ;;  %v3937_v56 = vld [vmem:[#allocation40_spill] sm:$0xff] }
 0x345   :  { %1278 = vmatpush1.msra.mxu1 %v2756_v58  ;;  %1208 = vmatprep.subr.mxu0 %v3878_v36 }
 0x346   :  { %1279 = vmatprep.subr.mxu1 %v3879_v54  ;;  %1209 = vmatpush1.msra.mxu0 %v3906_v12  ;;  %v3938_v54 = vld [vmem:[#allocation42_spill] sm:$0xff] }
 0x347   :  { %1280 = vmatpush1.msra.mxu1 %v3907_v13  ;;  %1210 = vmatprep.subr.mxu0 %v3908_v14 }
 0x348   :  { %1281 = vmatprep.subr.mxu1 %v3909_v15  ;;  %1211 = vmatpush1.msra.mxu0 %v3910_v16 }
 0x349   :  { %1282 = vmatpush1.msra.mxu1 %v3911_v17  ;;  %1212 = vmatprep.subr.mxu0 %v3912_v19 }
 0x34a   :  { %1283 = vmatprep.subr.mxu1 %v3913_v20  ;;  %1213 = vmatpush1.msra.mxu0 %v3914_v21 }
 0x34b   :  { %1284 = vmatpush1.msra.mxu1 %v3915_v22  ;;  %1214 = vmatprep.subr.mxu0 %v3916_v23 }
 0x34c   :  { %1285 = vmatprep.subr.mxu1 %v3917_v24  ;;  %1215 = vmatpush1.msra.mxu0 %v3918_v25 }
 0x34d   :  { %1286 = vmatpush1.msra.mxu1 %v3919_v26  ;;  %1216 = vmatprep.subr.mxu0 %v3920_v28 }
 0x34e   :  { %1287 = vmatprep.subr.mxu1 %v3921_v29  ;;  %1217 = vmatpush1.msra.mxu0 %v3922_v30 }
 0x34f   :  { %1250 = vmatprep.mubr.f32.mxu0 %v3923_v31  ;;  %1288 = vmatpush1.msra.mxu1 %v3924_v32  ;;  %v3940_v32 = vld [vmem:[#allocation31_spill] sm:$0xff] }
 0x350   :  { %1321 = vmatprep.mubr.f32.mxu1 %v3923_v31  ;;  %1375 = vmatprep.subr.mxu0 %v3159_v33 }
 0x351   :  { %1446 = vmatprep.subr.mxu1 %v3162_v34 }
 0x3ef   :  { %v1063_v46 = vpop.f32.mrf.mxu0  ;;  %v1134_v55 = vpop.f32.mrf.mxu1 }
 0x3f0   :  { %v1139_v48 = vadd.f32 %v1063_v46, %v3935_v47  ;;  %v1141_v57 = vadd.f32 %v1134_v55, %v3937_v56  ;;  %v3942_v46 = vld [vmem:[#allocation32_spill] sm:$0xff]  ;;  %v3349_v47 = vld [vmem:[#allocation3 + $0xe8] sm:$0xff]  ;;  %v3370_v55 = vld [vmem:[#allocation3 + $0xd0] sm:$0xff] }
 0x3f1   :  { %v1065_v49 = vpop.f32.mrf.mxu0  ;;  %v1136_v58 = vpop.f32.mrf.mxu1  ;;  %v3373_v56 = vld [vmem:[#allocation3 + $0xa8] sm:$0xff] }
 0x3f2   :  { %v2157_v50 = vmul.f32 -1.442695, %v1139_v48  ;;  %v1140_v52 = vadd.f32 %v1065_v49, %v3936_v51  ;;  %v2159_v36 = vmul.f32 -1.442695, %v1141_v57  ;;  %v1142_v12 = vadd.f32 %v1136_v58, %v3938_v54  ;;  %v3352_v48 = vld [vmem:[#allocation3 + $0xf8] sm:$0xff]  ;;  %v3355_v49 = vld [vmem:[#allocation3 + $0xe0] sm:$0xff] }
 0x3f3   :  { %v3361_v51 = vld [vmem:[#allocation3 + $0xc8] sm:$0xff]  ;;  %v3376_v57 = vld [vmem:[#allocation3 + $0xb8] sm:$0xff]  ;;  %v3379_v58 = vld [vmem:[#allocation3 + $0xa0] sm:$0xff] }
 0x3f4   :  { %2288 = vpow2.f32 %v2157_v50  ;;  %v2158_v53 = vmul.f32 -1.442695, %v1140_v52  ;;  %v3358_v50 = vld [vmem:[#allocation3 + $0xf0] sm:$0xff]  ;;  %v3364_v52 = vld [vmem:[#allocation3 + $0xd8] sm:$0xff]  ;;  %v3385_v54 = vld [vmem:[#allocation3 + $0x88] sm:$0xff] }
 0x3f6   :  { %2290 = vpow2.f32 %v2158_v53  ;;  %v3367_v53 = vld [vmem:[#allocation3 + $0xc0] sm:$0xff] }
 0x3f7   :  { %2292 = vpow2.f32 %v2159_v36  ;;  %v3382_v36 = vld [vmem:[#allocation3 + $0xb0] sm:$0xff] }
 0x3f8   :  { %2294 = vtanh.f32 %v1142_v12  ;;  %v3388_v12 = vld [vmem:[#allocation3 + $0x98] sm:$0xff] }
 0x401   :  { %v2289_v13 = vpop.eup %2288 }
 0x402   :  { %v1152_v14 = vadd.f32 1.0, %v2289_v13  ;;  %v3391_v13 = vld [vmem:[#allocation3 + $0x80] sm:$0xff] }
 0x403   :  { %v2291_v15 = vpop.eup %2290  ;;  %3943 = vst [vmem:[#allocation13_spill] sm:$0xff] %v3391_v13 }
 0x404   :  { %2296 = vrcp.f32 %v1152_v14  ;;  %v1153_v16 = vadd.f32 1.0, %v2291_v15  ;;  %v2293_v17 = vpop.eup %2292  ;;  %v3394_v14 = vld [vmem:[#allocation3 + $0x90] sm:$0xff]  ;;  %v3397_v15 = vld [vmem:[#allocation3 + $0x68] sm:$0xff] }
 0x405   :  { %v2295_v19 = vpop.eup %2294  ;;  %v1154_v23 = vadd.f32 1.0, %v2293_v17  ;;  %3944 = vst [vmem:[#allocation14_spill] sm:$0xff] %v3394_v14  ;;  %3945 = vst [vmem:[#allocation15_spill] sm:$0xff] %v3397_v15  ;;  %v3403_v17 = vld [vmem:[#allocation3 + $0x60] sm:$0xff] }
 0x406   :  { %2298 = vrcp.f32 %v1153_v16  ;;  %v3400_v16 = vld [vmem:[#allocation3 + $0x78] sm:$0xff]  ;;  %3947 = vst [vmem:[#allocation17_spill] sm:$0xff] %v3403_v17 }
 0x407   :  { %2300 = vrcp.f32 %v1154_v23  ;;  %3946 = vst [vmem:[#allocation16_spill] sm:$0xff] %v3400_v16  ;;  %v3418_v23 = vld [vmem:[#allocation3 + $0x50] sm:$0xff] }
 0x408   :  { %3952 = vst [vmem:[#allocation22_spill] sm:$0xff] %v3418_v23 }
 0x411   :  { %v2297_v20 = vpop.eup %2296 }
 0x412   :  { %v1163_v21 = vmul.f32 %v2297_v20, %v2295_v19  ;;  %v3406_v19 = vld [vmem:[#allocation3 + $0x70] sm:$0xff]  ;;  %v3409_v20 = vld [vmem:[#allocation3 + $0x48] sm:$0xff] }
 0x413   :  { %v2299_v22 = vpop.eup %2298  ;;  %3948 = vst [vmem:[#allocation18_spill] sm:$0xff] %v3406_v19  ;;  %3949 = vst [vmem:[#allocation19_spill] sm:$0xff] %v3409_v20 }
 0x414   :  { %v1162_v24 = vmul.f32 %v2299_v22, %v3170_v35  ;;  %v2301_v26 = vpop.eup %2300  ;;  %v3941_v35 = vld [vmem:[#allocation33_spill] sm:$0xff]  ;;  %v3415_v22 = vld [vmem:[#allocation3 + $0x40] sm:$0xff] }
 0x415   :  { %3951 = vst [vmem:[#allocation21_spill] sm:$0xff] %v3415_v22 }
 0x416   :  { %v3310_v25 = vadd.f32 %v1163_v21, %v1162_v24  ;;  %v3412_v21 = vld [vmem:[#allocation3 + $0x58] sm:$0xff]  ;;  %v3421_v24 = vld [vmem:[#allocation3 + $0x28] sm:$0xff] }
 0x417   :  { %3950 = vst [vmem:[#allocation20_spill] sm:$0xff] %v3412_v21  ;;  %3953 = vst [vmem:[#allocation23_spill] sm:$0xff] %v3421_v24 }
 0x418   :  { %2302 = vtanh.f32 %v3310_v25 }
 0x425   :  { %v2303_v28 = vpop.eup %2302 }
 0x426   :  { %v3313_v29 = vmul.f32 %v2303_v28, %v2301_v26  ;;  %v3424_v26 = vld [vmem:[#allocation3 + $0x38] sm:$0xff]  ;;  %v3427_v28 = vld [vmem:[#allocation3 + $0x20] sm:$0xff] }
 0x427   :  { %3954 = vst [vmem:[#allocation24_spill] sm:$0xff] %v3424_v26  ;;  %3955 = vst [vmem:[#allocation25_spill] sm:$0xff] %v3427_v28 }
 0x428   :  { %3939 = vst [vmem:[#allocation34_spill] sm:$0xff] %v3313_v29  ;;  %1251 = vmatmul.mubr.f32.vlgmr.msra.gmra.mxu0 %v3313_v29  ;;  %1322 = vmatmul.mubr.f32.vlgmr.msra.gmra.mxu1 %v3313_v29  ;;  %v1167_v30 = vmul.f32 %v3007_v8, %v3313_v29  ;;  %v3433_v29 = vld [vmem:[#allocation3 + $0x8] sm:$0xff] }
 0x429   :  { %1376 = vmatpush1.msra.mxu0 %v3179_v41  ;;  %1447 = vmatpush1.msra.mxu1 %v3182_v4  ;;  %3957 = vst [vmem:[#allocation27_spill] sm:$0xff] %v3433_v29 }
 0x42a   :  { %1168 = vadd.xlane.f32.xlu1 %v1167_v30  ;;  %1377 = vmatprep.subr.mxu0 %v3185_v42  ;;  %v3430_v30 = vld [vmem:[#allocation3 + $0x30] sm:$0xff] }
 0x42b   :  { %1448 = vmatprep.subr.mxu1 %v3188_v43  ;;  %1378 = vmatpush1.msra.mxu0 %v3191_v44  ;;  %3956 = vst [vmem:[#allocation26_spill] sm:$0xff] %v3430_v30 }
 0x42c   :  { %1449 = vmatpush1.msra.mxu1 %v3194_v62  ;;  %1379 = vmatprep.subr.mxu0 %v3197_v10 }
 0x42d   :  { %1450 = vmatprep.subr.mxu1 %v3200_v3  ;;  %1380 = vmatpush1.msra.mxu0 %v3203_v6 }
 0x42e   :  { %1451 = vmatpush1.msra.mxu1 %v3206_v2  ;;  %1381 = vmatprep.subr.mxu0 %v3209_v60 }
 0x42f   :  { %1452 = vmatprep.subr.mxu1 %v3212_v11  ;;  %1382 = vmatpush1.msra.mxu0 %v3215_v27 }
 0x430   :  { %1453 = vmatpush1.msra.mxu1 %v3218_v45  ;;  %1383 = vmatprep.subr.mxu0 %v3221_v63 }
 0x431   :  { %1454 = vmatprep.subr.mxu1 %v3224_v5  ;;  %1384 = vmatpush1.msra.mxu0 %v3227_v1 }
 0x432   :  { %1455 = vmatpush1.msra.mxu1 %v3230_v61  ;;  %1385 = vmatprep.subr.mxu0 %v3233_v59 }
 0x433   :  { %1456 = vmatprep.subr.mxu1 %v3236_v9  ;;  %1386 = vmatpush1.msra.mxu0 %v3239_v7 }
 0x434   :  { %1457 = vmatpush1.msra.mxu1 %v3940_v32  ;;  %1387 = vmatprep.subr.mxu0 %v3941_v35 }
 0x435   :  { %1458 = vmatprep.subr.mxu1 %v3942_v46  ;;  %1388 = vmatpush1.msra.mxu0 %v3251_v40 }
 0x436   :  { %1459 = vmatpush1.msra.mxu1 %v3254_v39  ;;  %1389 = vmatprep.subr.mxu0 %v3257_v18 }
 0x437   :  { %1460 = vmatprep.subr.mxu1 %v3260_v0  ;;  %1390 = vmatpush1.msra.mxu0 %v3263_v37 }
 0x438   :  { %1461 = vmatpush1.msra.mxu1 %v3266_v38  ;;  %1391 = vmatprep.subr.mxu0 %v3349_v47 }
 0x439   :  { %1462 = vmatprep.subr.mxu1 %v3352_v48  ;;  %1392 = vmatpush1.msra.mxu0 %v3355_v49 }
 0x43a   :  { %1463 = vmatpush1.msra.mxu1 %v3358_v50  ;;  %1393 = vmatprep.subr.mxu0 %v3361_v51 }
 0x43b   :  { %1464 = vmatprep.subr.mxu1 %v3364_v52  ;;  %1394 = vmatpush1.msra.mxu0 %v3367_v53 }
 0x43c   :  { %1465 = vmatpush1.msra.mxu1 %v3370_v55  ;;  %1395 = vmatprep.subr.mxu0 %v3373_v56 }
 0x43d   :  { %1466 = vmatprep.subr.mxu1 %v3376_v57  ;;  %1396 = vmatpush1.msra.mxu0 %v3379_v58 }
 0x43e   :  { %1467 = vmatpush1.msra.mxu1 %v3382_v36  ;;  %1397 = vmatprep.subr.mxu0 %v3385_v54 }
 0x43f   :  { %1468 = vmatprep.subr.mxu1 %v3388_v12  ;;  %1398 = vmatpush1.msra.mxu0 %v3391_v13 }
 0x440   :  { %1469 = vmatpush1.msra.mxu1 %v3394_v14  ;;  %1399 = vmatprep.subr.mxu0 %v3397_v15 }
 0x441   :  { %1470 = vmatprep.subr.mxu1 %v3400_v16  ;;  %1400 = vmatpush1.msra.mxu0 %v3403_v17  ;;  %v3963_v17 = vld [vmem:[#allocation44_spill] sm:$0xff] }
 0x442   :  { %1471 = vmatpush1.msra.mxu1 %v3406_v19  ;;  %1401 = vmatprep.subr.mxu0 %v3409_v20 }
 0x443   :  { %1472 = vmatprep.subr.mxu1 %v3412_v21  ;;  %1402 = vmatpush1.msra.mxu0 %v3415_v22  ;;  %v3962_v21 = vld [vmem:[#allocation45_spill] sm:$0xff] }
 0x444   :  { %1473 = vmatpush1.msra.mxu1 %v3418_v23  ;;  %1403 = vmatprep.subr.mxu0 %v3421_v24  ;;  %v3436_v23 = vld [vmem:[#allocation3 + $0x18] sm:$0xff]  ;;  %v3439_v24 = vld [vmem:[#allocation3] sm:$0xff] }
 0x445   :  { %1474 = vmatprep.subr.mxu1 %v3424_v26  ;;  %1404 = vmatpush1.msra.mxu0 %v3427_v28  ;;  %3958 = vst [vmem:[#allocation28_spill] sm:$0xff] %v3436_v23  ;;  %3959 = vst [vmem:[#allocation29_spill] sm:$0xff] %v3439_v24  ;;  %v3443_v26 = vld [vmem:[#allocation3 + $0x10] sm:$0xff] }
 0x446   :  { %1475 = vmatpush1.msra.mxu1 %v3430_v30  ;;  %1405 = vmatprep.subr.mxu0 %v3433_v29  ;;  %3960 = vst [vmem:[#allocation30_spill] sm:$0xff] %v3443_v26  ;;  %v3961_v30 = vld [vmem:[#allocation43_spill] sm:$0xff] }
 0x447   :  { %1476 = vmatprep.subr.mxu1 %v3436_v23  ;;  %1406 = vmatpush1.msra.mxu0 %v3439_v24 }
 0x448   :  { %1439 = vmatprep.mubr.f32.mxu0 %v3923_v31  ;;  %1477 = vmatpush1.msra.mxu1 %v3443_v26 }
 0x449   :  { %1510 = vmatprep.mubr.f32.mxu1 %v3923_v31  ;;  %1564 = vmatprep.subr.mxu0 %v3159_v33  ;;  %v3964_v31 = vld [vmem:[#allocation46_spill] sm:$0xff] }
 0x44a   :  { %1635 = vmatprep.subr.mxu1 %v3162_v34 }
 0x4e8   :  { %v1252_v29 = vpop.f32.mrf.mxu0  ;;  %v1323_v19 = vpop.f32.mrf.mxu1 }
 0x4e9   :  { %v1328_v28 = vadd.f32 %v1252_v29, %v3961_v30  ;;  %v1330_v16 = vadd.f32 %v1323_v19, %v3963_v17  ;;  %v3972_v30 = vld [vmem:[#allocation19_spill] sm:$0xff] }
 0x4ea   :  { %v1254_v23 = vpop.f32.mrf.mxu0  ;;  %v1325_v26 = vpop.f32.mrf.mxu1 }
 0x4eb   :  { %v2160_v22 = vmul.f32 -1.442695, %v1328_v28  ;;  %v1329_v20 = vadd.f32 %v1254_v23, %v3962_v21  ;;  %v2162_v15 = vmul.f32 -1.442695, %v1330_v16  ;;  %v1331_v14 = vadd.f32 %v1325_v26, %v3964_v31  ;;  %v3970_v16 = vld [vmem:[#allocation17_spill] sm:$0xff]  ;;  %v3971_v26 = vld [vmem:[#allocation18_spill] sm:$0xff] }
 0x4ed   :  { %2304 = vpow2.f32 %v2160_v22  ;;  %v2161_v24 = vmul.f32 -1.442695, %v1329_v20 }
 0x4ef   :  { %2306 = vpow2.f32 %v2161_v24 }
 0x4f0   :  { %2308 = vpow2.f32 %v2162_v15 }
 0x4f1   :  { %2310 = vtanh.f32 %v1331_v14  ;;  %v3969_v14 = vld [vmem:[#allocation16_spill] sm:$0xff] }
 0x4fa   :  { %v2305_v33 = vpop.eup %2304 }
 0x4fb   :  { %v1341_v13 = vadd.f32 1.0, %v2305_v33 }
 0x4fc   :  { %v2307_v34 = vpop.eup %2306 }
 0x4fd   :  { %2312 = vrcp.f32 %v1341_v13  ;;  %v1342_v29 = vadd.f32 1.0, %v2307_v34  ;;  %v2309_v28 = vpop.eup %2308  ;;  %v3968_v13 = vld [vmem:[#allocation15_spill] sm:$0xff] }
 0x4fe   :  { %v2311_v21 = vpop.eup %2310  ;;  %v1343_v24 = vadd.f32 1.0, %v2309_v28  ;;  %v3974_v28 = vld [vmem:[#allocation21_spill] sm:$0xff] }
 0x4ff   :  { %2314 = vrcp.f32 %v1342_v29  ;;  %v3973_v29 = vld [vmem:[#allocation20_spill] sm:$0xff] }
 0x500   :  { %2316 = vrcp.f32 %v1343_v24  ;;  %v3979_v24 = vld [vmem:[#allocation26_spill] sm:$0xff] }
 0x50a   :  { %v2313_v22 = vpop.eup %2312 }
 0x50b   :  { %v1352_v20 = vmul.f32 %v2313_v22, %v2311_v21  ;;  %v3975_v21 = vld [vmem:[#allocation22_spill] sm:$0xff]  ;;  %v3976_v22 = vld [vmem:[#allocation23_spill] sm:$0xff] }
 0x50c   :  { %v2315_v23 = vpop.eup %2314 }
 0x50d   :  { %v1351_v17 = vmul.f32 %v2315_v23, %v3310_v25  ;;  %v2317_v31 = vpop.eup %2316  ;;  %v3967_v25 = vld [vmem:[#allocation14_spill] sm:$0xff]  ;;  %v3978_v23 = vld [vmem:[#allocation25_spill] sm:$0xff] }
 0x50f   :  { %v3454_v19 = vadd.f32 %v1352_v20, %v1351_v17  ;;  %v3977_v20 = vld [vmem:[#allocation24_spill] sm:$0xff]  ;;  %v3980_v17 = vld [vmem:[#allocation27_spill] sm:$0xff] }
 0x511   :  { %2318 = vtanh.f32 %v3454_v19 }
 0x51e   :  { %v2319_v33 = vpop.eup %2318 }
 0x51f   :  { %v3457_v15 = vmul.f32 %v2319_v33, %v2317_v31  ;;  %v3981_v31 = vld [vmem:[#allocation28_spill] sm:$0xff]  ;;  %v3982_v33 = vld [vmem:[#allocation29_spill] sm:$0xff] }
 0x521   :  { %3965 = vst [vmem:[#allocation35_spill] sm:$0xff] %v3457_v15  ;;  %1440 = vmatmul.mubr.f32.vlgmr.msra.gmra.mxu0 %v3457_v15  ;;  %1511 = vmatmul.mubr.f32.vlgmr.msra.gmra.mxu1 %v3457_v15  ;;  %v1356_v34 = vmul.f32 %v3007_v8, %v3457_v15  ;;  %v3966_v8 = vld [vmem:[#allocation13_spill] sm:$0xff]  ;;  %v3984_v15 = vld [vmem:[#allocation30_spill] sm:$0xff] }
 0x522   :  { %1565 = vmatpush1.msra.mxu0 %v3179_v41  ;;  %1636 = vmatpush1.msra.mxu1 %v3182_v4 }
 0x523   :  { %1357 = vadd.xlane.f32.xlu0 %v1356_v34  ;;  %1566 = vmatprep.subr.mxu0 %v3185_v42  ;;  %v3983_v34 = vmov 0.0  }
 0x524   :  { %1637 = vmatprep.subr.mxu1 %v3188_v43  ;;  %1567 = vmatpush1.msra.mxu0 %v3191_v44 }
 0x525   :  { %1638 = vmatpush1.msra.mxu1 %v3194_v62  ;;  %1568 = vmatprep.subr.mxu0 %v3197_v10 }
 0x526   :  { %1639 = vmatprep.subr.mxu1 %v3200_v3  ;;  %1569 = vmatpush1.msra.mxu0 %v3203_v6 }
 0x527   :  { %1640 = vmatpush1.msra.mxu1 %v3206_v2  ;;  %1570 = vmatprep.subr.mxu0 %v3209_v60 }
 0x528   :  { %1641 = vmatprep.subr.mxu1 %v3212_v11  ;;  %1571 = vmatpush1.msra.mxu0 %v3215_v27 }
 0x529   :  { %1642 = vmatpush1.msra.mxu1 %v3218_v45  ;;  %1572 = vmatprep.subr.mxu0 %v3221_v63 }
 0x52a   :  { %1643 = vmatprep.subr.mxu1 %v3224_v5  ;;  %1573 = vmatpush1.msra.mxu0 %v3227_v1 }
 0x52b   :  { %1644 = vmatpush1.msra.mxu1 %v3230_v61  ;;  %1574 = vmatprep.subr.mxu0 %v3233_v59 }
 0x52c   :  { %1645 = vmatprep.subr.mxu1 %v3236_v9  ;;  %1575 = vmatpush1.msra.mxu0 %v3239_v7 }
 0x52d   :  { %1646 = vmatpush1.msra.mxu1 %v3940_v32  ;;  %1576 = vmatprep.subr.mxu0 %v3941_v35 }
 0x52e   :  { %1647 = vmatprep.subr.mxu1 %v3942_v46  ;;  %1577 = vmatpush1.msra.mxu0 %v3251_v40 }
 0x52f   :  { %1648 = vmatpush1.msra.mxu1 %v3254_v39  ;;  %1578 = vmatprep.subr.mxu0 %v3257_v18 }
 0x530   :  { %1649 = vmatprep.subr.mxu1 %v3260_v0  ;;  %1579 = vmatpush1.msra.mxu0 %v3263_v37 }
 0x531   :  { %1650 = vmatpush1.msra.mxu1 %v3266_v38  ;;  %1580 = vmatprep.subr.mxu0 %v3349_v47 }
 0x532   :  { %1651 = vmatprep.subr.mxu1 %v3352_v48  ;;  %1581 = vmatpush1.msra.mxu0 %v3355_v49 }
 0x533   :  { %1652 = vmatpush1.msra.mxu1 %v3358_v50  ;;  %1582 = vmatprep.subr.mxu0 %v3361_v51 }
 0x534   :  { %1653 = vmatprep.subr.mxu1 %v3364_v52  ;;  %1583 = vmatpush1.msra.mxu0 %v3367_v53 }
 0x535   :  { %1654 = vmatpush1.msra.mxu1 %v3370_v55  ;;  %1584 = vmatprep.subr.mxu0 %v3373_v56 }
 0x536   :  { %1655 = vmatprep.subr.mxu1 %v3376_v57  ;;  %1585 = vmatpush1.msra.mxu0 %v3379_v58 }
 0x537   :  { %1656 = vmatpush1.msra.mxu1 %v3382_v36  ;;  %1586 = vmatprep.subr.mxu0 %v3385_v54 }
 0x538   :  { %1657 = vmatprep.subr.mxu1 %v3388_v12  ;;  %1587 = vmatpush1.msra.mxu0 %v3966_v8 }
 0x539   :  { %1658 = vmatpush1.msra.mxu1 %v3967_v25  ;;  %1588 = vmatprep.subr.mxu0 %v3968_v13 }
 0x53a   :  { %1659 = vmatprep.subr.mxu1 %v3969_v14  ;;  %1589 = vmatpush1.msra.mxu0 %v3970_v16 }
 0x53b   :  { %1660 = vmatpush1.msra.mxu1 %v3971_v26  ;;  %1590 = vmatprep.subr.mxu0 %v3972_v30  ;;  %v3989_v26 = vld [vmem:[#allocation48_spill] sm:$0xff] }
 0x53c   :  { %1661 = vmatprep.subr.mxu1 %v3973_v29  ;;  %1591 = vmatpush1.msra.mxu0 %v3974_v28 }
 0x53d   :  { %1662 = vmatpush1.msra.mxu1 %v3975_v21  ;;  %1592 = vmatprep.subr.mxu0 %v3976_v22  ;;  %v3985_v21 = vld [vmem:[#allocation12_spill] sm:$0xff]  ;;  %v3986_v22 = vld [vmem:[#allocation9_spill] sm:$0xff] }
 0x53e   :  { %1663 = vmatprep.subr.mxu1 %v3977_v20  ;;  %1593 = vmatpush1.msra.mxu0 %v3978_v23  ;;  %v3987_v23 = vld [vmem:[#allocation47_spill] sm:$0xff] }
 0x53f   :  { %1664 = vmatpush1.msra.mxu1 %v3979_v24  ;;  %1594 = vmatprep.subr.mxu0 %v3980_v17  ;;  %v3988_v17 = vld [vmem:[#allocation49_spill] sm:$0xff] }
 0x540   :  { %1665 = vmatprep.subr.mxu1 %v3981_v31  ;;  %1595 = vmatpush1.msra.mxu0 %v3982_v33 }
 0x541   :  { %1628 = vmatprep.mubr.f32.mxu0 %v3983_v34  ;;  %1666 = vmatpush1.msra.mxu1 %v3984_v15 }
 0x542   :  { %1699 = vmatprep.mubr.f32.mxu1 %v3983_v34  ;;  %1753 = vmatprep.subr.mxu0 %v3985_v21  ;;  %v3990_v34 = vld [vmem:[#allocation50_spill] sm:$0xff] }
 0x543   :  { %1824 = vmatprep.subr.mxu1 %v3986_v22 }
 0x5e1   :  { %v1441_v20 = vpop.f32.mrf.mxu0  ;;  %v1512_v33 = vpop.f32.mrf.mxu1 }
 0x5e2   :  { %v1517_v28 = vadd.f32 %v1441_v20, %v3987_v23  ;;  %v1519_v16 = vadd.f32 %v1512_v33, %v3989_v26 }
 0x5e3   :  { %v1443_v24 = vpop.f32.mrf.mxu0  ;;  %v1514_v15 = vpop.f32.mrf.mxu1 }
 0x5e4   :  { %v2163_v29 = vmul.f32 -1.442695, %v1517_v28  ;;  %v1518_v30 = vadd.f32 %v1443_v24, %v3988_v17  ;;  %v2165_v14 = vmul.f32 -1.442695, %v1519_v16  ;;  %v1520_v13 = vadd.f32 %v1514_v15, %v3990_v34 }
 0x5e6   :  { %2320 = vpow2.f32 %v2163_v29  ;;  %v2164_v31 = vmul.f32 -1.442695, %v1518_v30 }
 0x5e8   :  { %2322 = vpow2.f32 %v2164_v31 }
 0x5e9   :  { %2324 = vpow2.f32 %v2165_v14 }
 0x5ea   :  { %2326 = vtanh.f32 %v1520_v13 }
 0x5f3   :  { %v2321_v21 = vpop.eup %2320 }
 0x5f4   :  { %v1530_v25 = vadd.f32 1.0, %v2321_v21 }
 0x5f5   :  { %v2323_v22 = vpop.eup %2322 }
 0x5f6   :  { %2328 = vrcp.f32 %v1530_v25  ;;  %v1531_v20 = vadd.f32 1.0, %v2323_v22  ;;  %v2325_v28 = vpop.eup %2324  ;;  %v3544_v25 = vld [vmem:[%s3723_s5] ss:$0 sm:$0xff] }
 0x5f7   :  { %v2327_v23 = vpop.eup %2326  ;;  %v1532_v17 = vadd.f32 1.0, %v2325_v28 }
 0x5f8   :  { %2330 = vrcp.f32 %v1531_v20  ;;  %v4013_v20 = vld [vmem:[#allocation55_spill] sm:$0xff] }
 0x5f9   :  { %2332 = vrcp.f32 %v1532_v17 }
 0x603   :  { %v2329_v29 = vpop.eup %2328 }
 0x604   :  { %v1541_v30 = vmul.f32 %v2329_v29, %v2327_v23 }
 0x605   :  { %v2331_v24 = vpop.eup %2330 }
 0x606   :  { %v1540_v26 = vmul.f32 %v2331_v24, %v3454_v19  ;;  %v2333_v15 = vpop.eup %2332 }
 0x608   :  { %v3534_v31 = vadd.f32 %v1541_v30, %v1540_v26  ;;  %v4014_v30 = vld [vmem:[#allocation57_spill] sm:$0xff] }
 0x60a   :  { %2334 = vtanh.f32 %v3534_v31 }
 0x617   :  { %v2335_v14 = vpop.eup %2334 }
 0x618   :  { %v3537_v16 = vmul.f32 %v2335_v14, %v2333_v15 }
 0x61a   :  { %1629 = vmatmul.mubr.f32.vlgmr.msra.gmra.mxu0 %v3537_v16  ;;  %1700 = vmatmul.mubr.f32.vlgmr.msra.gmra.mxu1 %v3537_v16  ;;  %v1545_v19 = vmul.f32 %v3544_v25, %v3537_v16 }
 0x61b   :  { %1754 = vmatpush1.msra.mxu0 %v3179_v41  ;;  %1825 = vmatpush1.msra.mxu1 %v3182_v4  ;;  %v3993_v41 = vld [vmem:[#allocation16_spill] sm:$0xff]  ;;  %v3994_v4 = vld [vmem:[#allocation17_spill] sm:$0xff] }
 0x61c   :  { %1546 = vadd.xlane.f32.xlu1 %v1545_v19  ;;  %1755 = vmatprep.subr.mxu0 %v3185_v42  ;;  %v3995_v42 = vld [vmem:[#allocation18_spill] sm:$0xff] }
 0x61d   :  { %1826 = vmatprep.subr.mxu1 %v3188_v43  ;;  %1756 = vmatpush1.msra.mxu0 %v3191_v44  ;;  %v3996_v43 = vld [vmem:[#allocation19_spill] sm:$0xff]  ;;  %v3997_v44 = vld [vmem:[#allocation20_spill] sm:$0xff] }
 0x61e   :  { %1827 = vmatpush1.msra.mxu1 %v3194_v62  ;;  %1757 = vmatprep.subr.mxu0 %v3197_v10  ;;  %v3998_v62 = vld [vmem:[#allocation21_spill] sm:$0xff]  ;;  %v3999_v10 = vld [vmem:[#allocation22_spill] sm:$0xff] }
 0x61f   :  { %1828 = vmatprep.subr.mxu1 %v3200_v3  ;;  %1758 = vmatpush1.msra.mxu0 %v3203_v6  ;;  %v4000_v3 = vld [vmem:[#allocation23_spill] sm:$0xff]  ;;  %v4001_v6 = vld [vmem:[#allocation24_spill] sm:$0xff] }
 0x620   :  { %1829 = vmatpush1.msra.mxu1 %v3206_v2  ;;  %1759 = vmatprep.subr.mxu0 %v3209_v60  ;;  %v4002_v2 = vld [vmem:[#allocation25_spill] sm:$0xff]  ;;  %v4003_v60 = vld [vmem:[#allocation26_spill] sm:$0xff] }
 0x621   :  { %1830 = vmatprep.subr.mxu1 %v3212_v11  ;;  %1760 = vmatpush1.msra.mxu0 %v3215_v27  ;;  %v4004_v11 = vld [vmem:[#allocation27_spill] sm:$0xff]  ;;  %v4005_v27 = vld [vmem:[#allocation28_spill] sm:$0xff] }
 0x622   :  { %1831 = vmatpush1.msra.mxu1 %v3218_v45  ;;  %1761 = vmatprep.subr.mxu0 %v3221_v63  ;;  %v4006_v45 = vld [vmem:[#allocation29_spill] sm:$0xff]  ;;  %v4007_v63 = vmov 0.0  }
 0x623   :  { %1832 = vmatprep.subr.mxu1 %v3224_v5  ;;  %1762 = vmatpush1.msra.mxu0 %v3227_v1  ;;  %v4008_v5 = vld [vmem:[#allocation30_spill] sm:$0xff] }
 0x624   :  { %1833 = vmatpush1.msra.mxu1 %v3230_v61  ;;  %1763 = vmatprep.subr.mxu0 %v3233_v59  ;;  %v4009_v61 = vld [vmem:[#allocation51_spill] sm:$0xff] }
 0x625   :  { %1834 = vmatprep.subr.mxu1 %v3236_v9  ;;  %1764 = vmatpush1.msra.mxu0 %v3239_v7 }
 0x626   :  { %1835 = vmatpush1.msra.mxu1 %v3940_v32  ;;  %1765 = vmatprep.subr.mxu0 %v3941_v35  ;;  %v4011_v32 = vld [vmem:[#allocation52_spill] sm:$0xff] }
 0x627   :  { %1836 = vmatprep.subr.mxu1 %v3942_v46  ;;  %1766 = vmatpush1.msra.mxu0 %v3251_v40 }
 0x628   :  { %1837 = vmatpush1.msra.mxu1 %v3254_v39  ;;  %1767 = vmatprep.subr.mxu0 %v3257_v18  ;;  %v3991_v18 = vld [vmem:[#allocation14_spill] sm:$0xff]  ;;  %v3992_v39 = vld [vmem:[#allocation15_spill] sm:$0xff] }
 0x629   :  { %1838 = vmatprep.subr.mxu1 %v3260_v0  ;;  %1768 = vmatpush1.msra.mxu0 %v3263_v37  ;;  %v4010_v0 = vld [vmem:[#allocation53_spill] sm:$0xff] }
 0x62a   :  { %1839 = vmatpush1.msra.mxu1 %v3266_v38  ;;  %1769 = vmatprep.subr.mxu0 %v3349_v47 }
 0x62b   :  { %1840 = vmatprep.subr.mxu1 %v3352_v48  ;;  %1770 = vmatpush1.msra.mxu0 %v3355_v49  ;;  %v4012_v48 = vld [vmem:[#allocation54_spill] sm:$0xff] }
 0x62c   :  { %1841 = vmatpush1.msra.mxu1 %v3358_v50  ;;  %1771 = vmatprep.subr.mxu0 %v3361_v51 }
 0x62d   :  { %1842 = vmatprep.subr.mxu1 %v3364_v52  ;;  %1772 = vmatpush1.msra.mxu0 %v3367_v53 }
 0x62e   :  { %1843 = vmatpush1.msra.mxu1 %v3370_v55  ;;  %1773 = vmatprep.subr.mxu0 %v3373_v56 }
 0x62f   :  { %1844 = vmatprep.subr.mxu1 %v3376_v57  ;;  %1774 = vmatpush1.msra.mxu0 %v3379_v58 }
 0x630   :  { %1845 = vmatpush1.msra.mxu1 %v3382_v36  ;;  %1775 = vmatprep.subr.mxu0 %v3385_v54 }
 0x631   :  { %1846 = vmatprep.subr.mxu1 %v3388_v12  ;;  %1776 = vmatpush1.msra.mxu0 %v3966_v8 }
 0x632   :  { %1847 = vmatpush1.msra.mxu1 %v3991_v18  ;;  %1777 = vmatprep.subr.mxu0 %v3992_v39  ;;  %v4016_v18 = vld [vmem:[#allocation58_spill] sm:$0xff] }
 0x633   :  { %1848 = vmatprep.subr.mxu1 %v3993_v41  ;;  %1778 = vmatpush1.msra.mxu0 %v3994_v4 }
 0x634   :  { %1849 = vmatpush1.msra.mxu1 %v3995_v42  ;;  %1779 = vmatprep.subr.mxu0 %v3996_v43 }
 0x635   :  { %1850 = vmatprep.subr.mxu1 %v3997_v44  ;;  %1780 = vmatpush1.msra.mxu0 %v3998_v62 }
 0x636   :  { %1851 = vmatpush1.msra.mxu1 %v3999_v10  ;;  %1781 = vmatprep.subr.mxu0 %v4000_v3 }
 0x637   :  { %1852 = vmatprep.subr.mxu1 %v4001_v6  ;;  %1782 = vmatpush1.msra.mxu0 %v4002_v2 }
 0x638   :  { %1853 = vmatpush1.msra.mxu1 %v4003_v60  ;;  %1783 = vmatprep.subr.mxu0 %v4004_v11 }
 0x639   :  { %1854 = vmatprep.subr.mxu1 %v4005_v27  ;;  %1784 = vmatpush1.msra.mxu0 %v4006_v45 }
 0x63a   :  { %1817 = vmatprep.mubr.f32.mxu0 %v4007_v63  ;;  %1855 = vmatpush1.msra.mxu1 %v4008_v5 }
 0x63b   :  { %1888 = vmatprep.mubr.f32.mxu1 %v4007_v63  ;;  %2199 = vmatprep.subr.mxu1 %v4007_v63 }
 0x63c   :  { %2194 = vmatprep.subr.mxu0 %v4007_v63 }
 0x6da   :  { %v1630_v1 = vpop.f32.mrf.mxu0  ;;  %v1701_v40 = vpop.f32.mrf.mxu1 }
 0x6db   :  { %v1706_v59 = vadd.f32 %v1630_v1, %v4009_v61  ;;  %v1708_v35 = vadd.f32 %v1701_v40, %v4011_v32  ;;  %v1955_v61 = vld [vmem:[%s3724_s6 + $0x78] sm:$0xff]  ;;  %v1957_v32 = vld [vmem:[%s3725_s7] sm:$0xf] }
 0x6dc   :  { %v1632_v9 = vpop.f32.mrf.mxu0  ;;  %v1703_v46 = vpop.f32.mrf.mxu1  ;;  %v1947_v40 = vld [vmem:[%s3724_s6 + $0x38] sm:$0xff] }
 0x6dd   :  { %v2166_v7 = vmul.f32 -1.442695, %v1706_v59  ;;  %v1707_v37 = vadd.f32 %v1632_v9, %v4010_v0  ;;  %v2168_v47 = vmul.f32 -1.442695, %v1708_v35  ;;  %v1709_v49 = vadd.f32 %v1703_v46, %v4012_v48  ;;  %v1954_v59 = vld [vmem:[%s3724_s6 + $0x70] sm:$0xff]  ;;  %v1953_v9 = vld [vmem:[%s3724_s6 + $0x68] sm:$0xff] }
 0x6de   :  { %v1950_v0 = vld [vmem:[%s3724_s6 + $0x50] sm:$0xff]  ;;  %v1956_v46 = vld [vmem:[%s3719_s1] sm:$0xff] }
 0x6df   :  { %2336 = vpow2.f32 %v2166_v7  ;;  %v2167_v38 = vmul.f32 -1.442695, %v1707_v37  ;;  %v1951_v7 = vld [vmem:[%s3724_s6 + $0x58] sm:$0xff]  ;;  %v1949_v37 = vld [vmem:[%s3724_s6 + $0x48] sm:$0xff]  ;;  %v1946_v35 = vld [vmem:[%s3724_s6 + $0x30] sm:$0xff] }
 0x6e0   :  { %v1944_v48 = vld [vmem:[%s3724_s6 + $0x20] sm:$0xff] }
 0x6e1   :  { %2338 = vpow2.f32 %v2167_v38  ;;  %v1948_v38 = vld [vmem:[%s3724_s6 + $0x40] sm:$0xff] }
 0x6e2   :  { %2340 = vpow2.f32 %v2168_v47  ;;  %v1945_v47 = vld [vmem:[%s3724_s6 + $0x28] sm:$0xff] }
 0x6e3   :  { %2342 = vtanh.f32 %v1709_v49  ;;  %v1943_v49 = vld [vmem:[%s3724_s6 + $0x18] sm:$0xff] }
 0x6ec   :  { %v2337_v50 = vpop.eup %2336 }
 0x6ed   :  { %v1719_v51 = vadd.f32 1.0, %v2337_v50  ;;  %v1942_v50 = vld [vmem:[%s3724_s6 + $0x10] sm:$0xff] }
 0x6ee   :  { %v2339_v52 = vpop.eup %2338 }
 0x6ef   :  { %2344 = vrcp.f32 %v1719_v51  ;;  %v1720_v53 = vadd.f32 1.0, %v2339_v52  ;;  %v2341_v55 = vpop.eup %2340  ;;  %v1941_v51 = vld [vmem:[%s3724_s6 + $0x8] sm:$0xff]  ;;  %v1940_v52 = vld [vmem:[%s3724_s6] sm:$0xff] }
 0x6f0   :  { %v2343_v56 = vpop.eup %2342  ;;  %v1721_v54 = vadd.f32 1.0, %v2341_v55 }
 0x6f1   :  { %2346 = vrcp.f32 %v1720_v53  ;;  %v615_v53 = vpop.xlane.xlu0 %614 }
 0x6f2   :  { %2348 = vrcp.f32 %v1721_v54 }
 0x6f5   :  { %v792_v55 = vpop.xlane.xlu0 %791 }
 0x6fc   :  { %v2345_v57 = vpop.eup %2344 }
 0x6fd   :  { %v1730_v58 = vmul.f32 %v2345_v57, %v2343_v56  ;;  %v793_v56 = vmax.f32 %v615_v53, %v792_v55  ;;  %v980_v57 = vpop.xlane.xlu1 %979 }
 0x6fe   :  { %v2347_v36 = vpop.eup %2346 }
 0x6ff   :  { %v1729_v12 = vmul.f32 %v2347_v36, %v3534_v31  ;;  %v2349_v13 = vpop.eup %2348  ;;  %v4015_v31 = vld [vmem:[#allocation56_spill] sm:$0xff]  ;;  %v794_v36 = vsub.f32 %v615_v53, %v793_v56  ;;  %v797_v54 = vsub.f32 %v792_v55, %v793_v56 }
 0x701   :  { %v1731_v8 = vadd.f32 %v1730_v58, %v1729_v12  ;;  %v981_v58 = vmax.f32 %v793_v56, %v980_v57  ;;  %v1169_v12 = vpop.xlane.xlu1 %1168 }
 0x703   :  { %2350 = vtanh.f32 %v1731_v8 }
 0x710   :  { %v2351_v33 = vpop.eup %2350 }
 0x711   :  { %v3619_v34 = vmul.f32 %v2351_v33, %v2349_v13  ;;  %v795_v13 = vmul.f32 1.442695, %v794_v36  ;;  %v798_v33 = vmul.f32 1.442695, %v797_v54 }
 0x713   :  { %1818 = vmatmul.mubr.f32.vlgmr.msra.gmra.mxu0 %v3619_v34  ;;  %1889 = vmatmul.mubr.f32.vlgmr.msra.gmra.mxu1 %v3619_v34  ;;  %v1734_v21 = vmul.f32 %v3544_v25, %v3619_v34 }
 0x714   :  { %2200 = vmatpush3.msra.mxu1 %v1955_v61  ;;  %2196 = vmatprep.mubr.msk.f32.mxu0 %vm2511_vm2, %v4007_v63  ;;  %v4017_v61 = vld [vmem:[#allocation59_spill] sm:$0xff] }
 0x715   :  { %1735 = vadd.xlane.f32.xlu0 %v1734_v21  ;;  %2201 = vmatprep.subr.mxu1 %v4007_v63  ;;  %v1170_v21 = vmax.f32 %v981_v58, %v1169_v12 }
 0x716   :  { %2202 = vmatpush3.msra.mxu1 %v1954_v59  ;;  %2231 = vmatprep.mubr.msk.f32.mxu1 %vm2511_vm2, %v4007_v63 }
 0x717   :  { %2203 = vmatprep.subr.mxu1 %v4007_v63  ;;  %2195 = vmatpush3.msk.msra.mxu0 %vm1962_vm1, %v1957_v32 }
 0x718   :  { %2204 = vmatpush3.msra.mxu1 %v1953_v9  ;;  %2197 = vmatmul.mubr.msk.f32.vlgmr.msra.gmra.mxu0 %vm1958_vm3, %v1956_v46  ;;  %v4018_v9 = vld [vmem:[#allocation11_spill] sm:$0xff] }
 0x719   :  { %2205 = vmatprep.subr.mxu1 %v4007_v63 }
 0x7d3   :  { %v1819_v22 = vpop.f32.mrf.mxu0  ;;  %v1890_v26 = vpop.f32.mrf.mxu1 }
 0x7d4   :  { %v1895_v28 = vadd.f32 %v1819_v22, %v4013_v20  ;;  %v1897_v15 = vadd.f32 %v1890_v26, %v4015_v31  ;;  %v985_v20 = vsub.f32 %v980_v57, %v981_v58 }
 0x7d5   :  { %v1821_v23 = vpop.f32.mrf.mxu0  ;;  %v1892_v14 = vpop.f32.mrf.mxu1 }
 0x7d6   :  { %v2169_v29 = vmul.f32 -1.442695, %v1895_v28  ;;  %v1896_v24 = vadd.f32 %v1821_v23, %v4014_v30  ;;  %v2171_v19 = vmul.f32 -1.442695, %v1897_v15  ;;  %v1898_v39 = vadd.f32 %v1892_v14, %v4016_v18  ;;  %v1358_v28 = vpop.xlane.xlu0 %1357 }
 0x7d7   :  { %v1171_v23 = vsub.f32 %v981_v58, %v1170_v21 }
 0x7d8   :  { %2352 = vpow2.f32 %v2169_v29  ;;  %v2170_v17 = vmul.f32 -1.442695, %v1896_v24  ;;  %v986_v29 = vmul.f32 1.442695, %v985_v20  ;;  %v1174_v24 = vsub.f32 %v1169_v12, %v1170_v21 }
 0x7d9   :  { %v1172_v30 = vmul.f32 1.442695, %v1171_v23 }
 0x7da   :  { %2354 = vpow2.f32 %v2170_v17  ;;  %v1547_v17 = vpop.xlane.xlu1 %1546  ;;  %v1175_v15 = vmul.f32 1.442695, %v1174_v24  ;;  %v1736_v18 = vpop.xlane.xlu0 %1735 }
 0x7db   :  { %2356 = vpow2.f32 %v2171_v19 }
 0x7dc   :  { %2358 = vtanh.f32 %v1898_v39 }
 0x7e5   :  { %v2353_v41 = vpop.eup %2352 }
 0x7e6   :  { %v1908_v4 = vadd.f32 1.0, %v2353_v41 }
 0x7e7   :  { %v2355_v42 = vpop.eup %2354 }
 0x7e8   :  { %2360 = vrcp.f32 %v1908_v4  ;;  %v1909_v43 = vadd.f32 1.0, %v2355_v42  ;;  %v2357_v44 = vpop.eup %2356 }
 0x7e9   :  { %v2359_v62 = vpop.eup %2358  ;;  %v1910_v2 = vadd.f32 1.0, %v2357_v44 }
 0x7ea   :  { %2362 = vrcp.f32 %v1909_v43 }
 0x7eb   :  { %2364 = vrcp.f32 %v1910_v2 }
 0x7f5   :  { %v2361_v10 = vpop.eup %2360 }
 0x7f6   :  { %v1919_v3 = vmul.f32 %v2361_v10, %v2359_v62 }
 0x7f7   :  { %v2363_v6 = vpop.eup %2362 }
 0x7f8   :  { %v1918_v60 = vmul.f32 %v2363_v6, %v1731_v8  ;;  %v2365_v27 = vpop.eup %2364  ;;  %v982_v8 = vsub.f32 %v793_v56, %v981_v58 }
 0x7fa   :  { %v1920_v11 = vadd.f32 %v1919_v3, %v1918_v60  ;;  %v983_v22 = vmul.f32 1.442695, %v982_v8  ;;  %v4020_v8 = vld [vmem:[#allocation34_spill] sm:$0xff] }
 0x7fc   :  { %2366 = vtanh.f32 %v1920_v11 }
 0x7fd   :  { %2368 = vpow2.f32 %v795_v13 }
 0x7fe   :  { %2370 = vpow2.f32 %v798_v33 }
 0x7ff   :  { %2372 = vpow2.f32 %v983_v22 }
 0x800   :  { %2374 = vpow2.f32 %v986_v29 }
 0x801   :  { %2376 = vpow2.f32 %v1172_v30 }
 0x802   :  { %2378 = vpow2.f32 %v1175_v15 }
 0x809   :  { %v2367_v45 = vpop.eup %2366 }
 0x80a   :  { %v3629_v5 = vmul.f32 %v2367_v45, %v2365_v27  ;;  %v2369_v39 = vpop.eup %2368 }
 0x80b   :  { %v2371_v4 = vpop.eup %2370  ;;  %v801_v59 = vmul.f32 %v2369_v39, %v4017_v61 }
 0x80c   :  { %v1923_v1 = vmul.f32 %v3544_v25, %v3629_v5  ;;  %v1952_v25 = vld [vmem:[%s3724_s6 + $0x60] sm:$0xff]  ;;  %v2373_v43 = vpop.eup %2372  ;;  %v800_v62 = vadd.f32 %v2371_v4, %v2369_v39 }
 0x80d   :  { %2206 = vmatpush3.msra.mxu1 %v1952_v25  ;;  %v2375_v60 = vpop.eup %2374  ;;  %v802_v25 = vmul.f32 %v2371_v4, %v4018_v9 }
 0x80e   :  { %1924 = vadd.xlane.f32.xlu1 %v1923_v1  ;;  %2207 = vmatprep.subr.mxu1 %v4007_v63  ;;  %v988_v6 = vmul.f32 %v2373_v43, %v800_v62  ;;  %v2377_v11 = vpop.eup %2376 }
 0x80f   :  { %2208 = vmatpush3.msra.mxu1 %v1951_v7 }
 0x810   :  { %2209 = vmatprep.subr.mxu1 %v4007_v63  ;;  %v989_v45 = vadd.f32 %v2375_v60, %v988_v6 }
 0x811   :  { %2210 = vmatpush3.msra.mxu1 %v1950_v0 }
 0x812   :  { %2211 = vmatprep.subr.mxu1 %v4007_v63  ;;  %v1177_v7 = vmul.f32 %v2377_v11, %v989_v45 }
 0x813   :  { %2212 = vmatpush3.msra.mxu1 %v1949_v37  ;;  %v2379_v37 = vpop.eup %2378 }
 0x814   :  { %2213 = vmatprep.subr.mxu1 %v4007_v63  ;;  %v1180_v13 = vmul.f32 %v2379_v37, %v4020_v8 }
 0x815   :  { %2214 = vmatpush3.msra.mxu1 %v1948_v38 }
 0x816   :  { %2215 = vmatprep.subr.mxu1 %v4007_v63 }
 0x817   :  { %2216 = vmatpush3.msra.mxu1 %v1947_v40  ;;  %v803_v40 = vadd.f32 %v802_v25, %v801_v59 }
 0x818   :  { %2217 = vmatprep.subr.mxu1 %v4007_v63 }
 0x819   :  { %2218 = vmatpush3.msra.mxu1 %v1946_v35  ;;  %v1178_v35 = vadd.f32 %v2379_v37, %v1177_v7 }
 0x81a   :  { %2219 = vmatprep.subr.mxu1 %v4007_v63 }
 0x81b   :  { %2220 = vmatpush3.msra.mxu1 %v1945_v47 }
 0x81c   :  { %2221 = vmatprep.subr.mxu1 %v4007_v63 }
 0x81d   :  { %2222 = vmatpush3.msra.mxu1 %v1944_v48  ;;  %v990_v48 = vmul.f32 %v2373_v43, %v803_v40 }
 0x81e   :  { %2223 = vmatprep.subr.mxu1 %v4007_v63 }
 0x81f   :  { %2224 = vmatpush3.msra.mxu1 %v1943_v49  ;;  %v4019_v49 = vld [vmem:[#allocation10_spill] sm:$0xff] }
 0x820   :  { %2225 = vmatprep.subr.mxu1 %v4007_v63 }
 0x821   :  { %2226 = vmatpush3.msra.mxu1 %v1942_v50  ;;  %v991_v50 = vmul.f32 %v2375_v60, %v4019_v49 }
 0x822   :  { %2227 = vmatprep.subr.mxu1 %v4007_v63 }
 0x823   :  { %2228 = vmatpush3.msra.mxu1 %v1941_v51  ;;  %v992_v36 = vadd.f32 %v991_v50, %v990_v48 }
 0x824   :  { %2229 = vmatprep.subr.mxu1 %v4007_v63  ;;  %v1359_v63 = vmax.f32 %v1170_v21, %v1358_v28 }
 0x825   :  { %2230 = vmatpush3.msra.mxu1 %v1940_v52  ;;  %v1179_v12 = vmul.f32 %v2377_v11, %v992_v36  ;;  %v2174_v11 = vld [vmem:[%s3726_s8] ss:$0 sm:$0xff] }
 0x826   :  { %v1360_v26 = vsub.f32 %v1170_v21, %v1359_v63  ;;  %v1548_v31 = vmax.f32 %v1359_v63, %v1547_v17  ;;  %v1363_v19 = vsub.f32 %v1358_v28, %v1359_v63 }
 0x827   :  { %v1181_v20 = vadd.f32 %v1180_v13, %v1179_v12 }
 0x828   :  { %v1361_v14 = vmul.f32 1.442695, %v1360_v26  ;;  %v1549_v41 = vsub.f32 %v1359_v63, %v1548_v31  ;;  %v1737_v42 = vmax.f32 %v1548_v31, %v1736_v18  ;;  %v1364_v44 = vmul.f32 1.442695, %v1363_v19  ;;  %v4021_v63 = vld [vmem:[#allocation35_spill] sm:$0xff] }
 0x829   :  { %v1552_v3 = vsub.f32 %v1547_v17, %v1548_v31 }
 0x82a   :  { %2380 = vpow2.f32 %v1361_v14  ;;  %v1550_v10 = vmul.f32 1.442695, %v1549_v41  ;;  %v1738_v2 = vsub.f32 %v1548_v31, %v1737_v42  ;;  %v1741_v0 = vsub.f32 %v1736_v18, %v1737_v42 }
 0x82b   :  { %2382 = vpow2.f32 %v1364_v44  ;;  %v1553_v27 = vmul.f32 1.442695, %v1552_v3 }
 0x82c   :  { %2384 = vpow2.f32 %v1550_v10  ;;  %v1739_v1 = vmul.f32 1.442695, %v1738_v2  ;;  %v1742_v46 = vmul.f32 1.442695, %v1741_v0  ;;  %v2032_v2 = vpop.f32.mrf.mxu0 }
 0x82d   :  { %2386 = vpow2.f32 %v1553_v27 }
 0x82e   :  { %2388 = vpow2.f32 %v1739_v1  ;;  %v2198_v60 = vpop.f32.mrf.mxu0 }
 0x82f   :  { %2390 = vpow2.f32 %v1742_v46 }
 0x837   :  { %v2381_v38 = vpop.eup %2380 }
 0x838   :  { %v1366_v51 = vmul.f32 %v2381_v38, %v1178_v35  ;;  %v2383_v55 = vpop.eup %2382  ;;  %v1368_v23 = vmul.f32 %v2381_v38, %v1181_v20 }
 0x839   :  { %v2385_v58 = vpop.eup %2384  ;;  %v1369_v29 = vmul.f32 %v2383_v55, %v4021_v63 }
 0x83a   :  { %v1367_v54 = vadd.f32 %v2383_v55, %v1366_v51  ;;  %v2387_v21 = vpop.eup %2386 }
 0x83b   :  { %v2389_v22 = vpop.eup %2388  ;;  %v1370_v17 = vadd.f32 %v1369_v29, %v1368_v23  ;;  %v1558_v15 = vmul.f32 %v2387_v21, %v3537_v16 }
 0x83c   :  { %v1555_v33 = vmul.f32 %v2385_v58, %v1367_v54  ;;  %v2391_v24 = vpop.eup %2390 }
 0x83d   :  { %v1557_v19 = vmul.f32 %v2385_v58, %v1370_v17 }
 0x83e   :  { %v1556_v28 = vadd.f32 %v2387_v21, %v1555_v33 }
 0x83f   :  { %v1559_v41 = vadd.f32 %v1558_v15, %v1557_v19 }
 0x840   :  { %v1744_v30 = vmul.f32 %v2389_v22, %v1556_v28 }
 0x841   :  { %v1746_v4 = vmul.f32 %v2389_v22, %v1559_v41 }
 0x842   :  { %v1745_v26 = vadd.f32 %v2391_v24, %v1744_v30 }
 0x897   :  { %v1925_v32 = vpop.xlane.xlu1 %1924 }
 0x898   :  { %v1926_v47 = vmax.f32 %v1737_v42, %v1925_v32 }
 0x89a   :  { %v1927_v52 = vsub.f32 %v1737_v42, %v1926_v47  ;;  %v1930_v53 = vsub.f32 %v1925_v32, %v1926_v47  ;;  %v1747_v42 = vmul.f32 %v2391_v24, %v3619_v34 }
 0x89c   :  { %v1928_v56 = vmul.f32 1.442695, %v1927_v52  ;;  %v1931_v57 = vmul.f32 1.442695, %v1930_v53  ;;  %v1748_v43 = vadd.f32 %v1747_v42, %v1746_v4 }
 0x89e   :  { %2392 = vpow2.f32 %v1928_v56 }
 0x89f   :  { %2394 = vpow2.f32 %v1931_v57 }
 0x8ab   :  { %v2393_v31 = vpop.eup %2392 }
 0x8ac   :  { %v1933_v14 = vmul.f32 %v2393_v31, %v1745_v26  ;;  %v2395_v18 = vpop.eup %2394  ;;  %v1935_v44 = vmul.f32 %v2393_v31, %v1748_v43 }
 0x8ad   :  { %v1936_v62 = vmul.f32 %v2395_v18, %v3629_v5 }
 0x8ae   :  { %v1934_v39 = vadd.f32 %v2395_v18, %v1933_v14 }
 0x8af   :  { %v1937_v10 = vadd.f32 %v1936_v62, %v1935_v44 }
 0x8b0   :  { %2396 = vrcp.f32 %v1934_v39 }
 0x8bd   :  { %v2397_v3 = vpop.eup %2396 }
 0x8be   :  { %v1939_v6 = vmul.f32 %v2397_v3, %v1937_v10 }
 0x8c0   :  { %2232 = vmatmul.mubr.f32.vlgmr.msra.gmra.mxu1 %v1939_v6 }
 0x980   :  { %v2102_v16 = vpop.f32.mrf.mxu1 }
 0x981   :  { %v2103_v27 = vadd.f32 %v2102_v16, %v2032_v2 }
 0x982   :  { %v2233_v45 = vpop.f32.mrf.mxu1 }
 0x983   :  { %v2113_v34 = vadd.f32 %v2174_v11, %v2103_v27 }
 0x985   :  { %2115 = vst.msk [vmem:[#allocation6] sm:$0xff] %vm2114_vm4, %v2113_v34 }
 0x986   :  { %2494 = shalt.err (!%p2491_p9)
}
 0x987   :  { %2125 = dma.vmem_to_hbm [thread:$0]  %s2123_s15, 128, %s3727_s9, [#allocation5]  }
 0x988   :  { %2505 = dma.done.wait [#allocation5], 128  }
 0x989   :  { %2506 = vsyncadd [#allocation5], 4294967168 }
 0x98a   :  { %2129 = vsyncpa [#allocation4], 1 }
 0x98b   :  { %2130 = vsyncpa [#allocation5], 1 }

</bundles_post_ra>
